<compile_context>
chip_gen: v7x
topology: tpu7x:2x2x1
jax: 0.10.0
libtpu: 0.0.40
codegen_flags: <defaults>
</compile_context>

<pallas_src>
import functools

import jax
import jax.numpy as jnp
from jax import lax
from jax.experimental import pallas as pl
from jax.experimental.pallas import tpu as pltpu


# ---------------------------------------------------------------------------
# Kernel
# ---------------------------------------------------------------------------
def _patch_nce_kernel(q_ref, kt_ref, o_ref, *, inv_temp, tq):
    # q_ref : (1, tq, dim)   query tile of batch b
    # kt_ref: (1, dim, P)    all keys of batch b, pre-transposed (resident)
    # o_ref : (1, tq, 1)     per-row NCE loss
    qi = pl.program_id(1)

    q = q_ref[0]                       # (tq, dim)
    kt = kt_ref[0]                     # (dim, P)

    # Similarity matrix S[r, c] = q_r . k_c; canonical (M,K)x(K,N) MXU matmul,
    # f32 accumulation.
    s = jnp.dot(q, kt, preferred_element_type=jnp.float32)          # (tq, P)
    p = s.shape[1]

    # Global row index inside this batch = qi * tq + r ; positive key = same idx.
    row = lax.broadcasted_iota(jnp.int32, (tq, p), 0) + qi * tq
    col = lax.broadcasted_iota(jnp.int32, (tq, p), 1)
    diag = row == col

    # l_pos from the diagonal (exactly one hit per row); negatives get -10.0
    # before the temperature scale — same order as the torch masked_fill_.
    pos = jnp.sum(jnp.where(diag, s, 0.0), axis=1, keepdims=True)    # (tq, 1)
    neg = jnp.where(diag, -10.0, s)                                  # (tq, P)

    pos_l = pos * inv_temp
    neg_l = neg * inv_temp

    # CrossEntropy(target=0, reduction='none') = logsumexp(logits) - logits[0]
    m = jnp.maximum(pos_l, jnp.max(neg_l, axis=1, keepdims=True))    # (tq, 1)
    sum_exp = jnp.exp(pos_l - m) + jnp.sum(jnp.exp(neg_l - m),
                                           axis=1, keepdims=True)
    loss = (m + jnp.log(sum_exp)) - pos_l                            # (tq, 1)

    o_ref[...] = loss[None].astype(o_ref.dtype)                      # (1, tq, 1)


# ---------------------------------------------------------------------------
# Wrapper
# ---------------------------------------------------------------------------
def patch_nce_loss(feat_q, feat_k, *, nce_temp=0.07, batch_size=1):
    """feat_q, feat_k: (N, dim) with N = batch_size * npatches -> loss (N,)."""
    n, dim = feat_q.shape
    assert feat_k.shape == (n, dim)
    assert n % batch_size == 0, "N must be divisible by batch_size (torch .view)"
    p = n // batch_size

    # Largest clean query tile: big M tiles for the MXU, few grid steps, while
    # keeping a (B, P/tq) grid so both v7x TensorCores get work.
    tq = p
    for cand in (256, 128):
        if p % cand == 0 and p >= cand:
            tq = cand
            break

    qb = feat_q.reshape(batch_size, p, dim)
    # Pre-transpose K once in the wrapper: (B, dim, P) -> canonical MXU layout
    # for the in-kernel matmul (avoids repeated in-kernel transposes of the
    # resident K block).
    ktb = feat_k.reshape(batch_size, p, dim).transpose(0, 2, 1)

    kernel = functools.partial(_patch_nce_kernel,
                               inv_temp=float(1.0 / nce_temp), tq=tq)

    out = pl.pallas_call(
        kernel,
        out_shape=jax.ShapeDtypeStruct((batch_size, p, 1), jnp.float32),
        grid_spec=pltpu.PrefetchScalarGridSpec(
            num_scalar_prefetch=0,
            grid=(batch_size, p // tq),
            in_specs=[
                pl.BlockSpec((1, tq, dim), lambda b, i: (b, i, 0)),
                pl.BlockSpec((1, dim, p), lambda b, i: (b, 0, 0)),
            ],
            out_specs=pl.BlockSpec((1, tq, 1), lambda b, i: (b, i, 0)),
        ),
        compiler_params=pltpu.CompilerParams(
            dimension_semantics=("parallel", "parallel")),
    )(qb, ktb)
    return out.reshape(n)


# ---------------------------------------------------------------------------
# Pure-JAX reference (mirrors the PyTorch forward exactly)
# ---------------------------------------------------------------------------
def ref_patch_nce_loss(feat_q, feat_k, *, nce_temp=0.07, batch_size=1):
    n, dim = feat_q.shape
    fq = feat_q.astype(jnp.float32)
    fk = feat_k.astype(jnp.float32)
    p = n // batch_size

    l_pos = jnp.sum(fq * fk, axis=1, keepdims=True)                  # (N, 1)
    qb = fq.reshape(batch_size, p, dim)
    kb = fk.reshape(batch_size, p, dim)
    l_neg = jnp.einsum("bpd,bqd->bpq", qb, kb,
                       precision=lax.Precision.HIGHEST)              # (B, P, P)
    eye = jnp.eye(p, dtype=bool)[None]
    l_neg = jnp.where(eye, -10.0, l_neg).reshape(n, p)

    out = jnp.concatenate([l_pos, l_neg], axis=1) / nce_temp         # (N, P+1)
    lse = jax.scipy.special.logsumexp(out, axis=1)
    return lse - out[:, 0]                                           # CE(target=0)


# ---------------------------------------------------------------------------
if __name__ == "__main__":
    key = jax.random.PRNGKey(0)
    kq, kk = jax.random.split(key)

    batch_size = 2
    npatches = 256          # patches per batch element
    dim = 128               # feature dim (lane-dense)
    n = batch_size * npatches

    fq = jax.random.normal(kq, (n, dim), dtype=jnp.float32)
    fk = jax.random.normal(kk, (n, dim), dtype=jnp.float32)
    # L2-normalize (PatchSampleF output is normalized) -> well-scaled logits.
    fq = fq / (jnp.linalg.norm(fq, axis=1, keepdims=True) + 1e-7)
    fk = fk / (jnp.linalg.norm(fk, axis=1, keepdims=True) + 1e-7)

    loss = patch_nce_loss(fq, fk, nce_temp=0.07, batch_size=batch_size)
    loss = jax.block_until_ready(loss)

    ref = ref_patch_nce_loss(fq, fk, nce_temp=0.07, batch_size=batch_size)

    assert loss.shape == (n,) and loss.dtype == jnp.float32
    if bool(jnp.allclose(loss, ref, atol=1e-4, rtol=1e-4)):
        print("KERNEL_OK")
    else:
        print("MISMATCH", float(jnp.max(jnp.abs(loss - ref))))
</pallas_src>

<mosaic_0001>
module attributes {stable_mosaic.version = 11 : i64} {
  func.func @_patch_nce_kernel(%arg0: i32, %arg1: i32, %arg2: memref<1x256x128xf32, #tpu.memory_space<vmem>>, %arg3: memref<1x128x256xf32, #tpu.memory_space<vmem>>, %arg4: memref<1x256x1xf32, #tpu.memory_space<vmem>>) attributes {dimension_semantics = [#tpu.dimension_semantics<parallel>, #tpu.dimension_semantics<parallel>], iteration_bounds = array<i64: 2, 1>, scalar_prefetch = 0 : i64, scratch_operands = 0 : i64, tpu.core_type = #tpu.core_type<tc>, window_params = [{transform_indices = @transform_0, window_bounds = array<i64: 1, 256, 128>}, {transform_indices = @transform_1, window_bounds = array<i64: 1, 128, 256>}, {transform_indices = @transform_2, window_bounds = array<i64: 1, 256, 1>}]} {
    %c0 = arith.constant 0 : index
    %c0_0 = arith.constant 0 : index
    %c0_1 = arith.constant 0 : index
    %0 = vector.load %arg2[%c0, %c0_0, %c0_1] : memref<1x256x128xf32, #tpu.memory_space<vmem>>, vector<1x256x128xf32>
    %1 = vector.shape_cast %0 : vector<1x256x128xf32> to vector<256x128xf32>
    %c0_2 = arith.constant 0 : index
    %c0_3 = arith.constant 0 : index
    %c0_4 = arith.constant 0 : index
    %2 = vector.load %arg3[%c0_2, %c0_3, %c0_4] : memref<1x128x256xf32, #tpu.memory_space<vmem>>, vector<1x128x256xf32>
    %3 = vector.shape_cast %2 : vector<1x128x256xf32> to vector<128x256xf32>
    %cst = arith.constant dense<0.000000e+00> : vector<256x256xf32>
    %4 = tpu.matmul %1, %3, %cst {dimension_numbers = #tpu.dot_dimension_numbers<[1], [0], [0], [1], [0, 0, 1, 1], [], []>} : vector<256x128xf32>, vector<128x256xf32>, vector<256x256xf32> -> vector<256x256xf32>
    %5 = tpu.iota {dimensions = array<i32: 0>} : vector<256x256xi32>
    %c256_i32 = arith.constant 256 : i32
    %6 = arith.muli %arg1, %c256_i32 : i32
    %7 = vector.broadcast %6 : i32 to vector<256x256xi32>
    %8 = arith.addi %5, %7 : vector<256x256xi32>
    %9 = tpu.iota {dimensions = array<i32: 1>} : vector<256x256xi32>
    %10 = arith.cmpi eq, %8, %9 : vector<256x256xi32>
    %cst_5 = arith.constant 0.000000e+00 : f32
    %11 = vector.broadcast %cst_5 : f32 to vector<256x256xf32>
    %12 = arith.select %10, %4, %11 : vector<256x256xi1>, vector<256x256xf32>
    %cst_6 = arith.constant dense<0.000000e+00> : vector<256xf32>
    %13 = vector.multi_reduction <add>, %12, %cst_6 [1] : vector<256x256xf32> to vector<256xf32>
    %14 = vector.shape_cast %13 : vector<256xf32> to vector<256x1xf32>
    %cst_7 = arith.constant -1.000000e+01 : f32
    %15 = vector.broadcast %cst_7 : f32 to vector<256x256xf32>
    %16 = arith.select %10, %15, %4 : vector<256x256xi1>, vector<256x256xf32>
    %cst_8 = arith.constant 14.2857141 : f32
    %17 = vector.broadcast %cst_8 : f32 to vector<256x1xf32>
    %18 = arith.mulf %14, %17 : vector<256x1xf32>
    %cst_9 = arith.constant 14.2857141 : f32
    %19 = vector.broadcast %cst_9 : f32 to vector<256x256xf32>
    %20 = arith.mulf %16, %19 : vector<256x256xf32>
    %cst_10 = arith.constant dense<0xFF800000> : vector<256xf32>
    %21 = vector.multi_reduction <maximumf>, %20, %cst_10 [1] : vector<256x256xf32> to vector<256xf32>
    %22 = vector.shape_cast %21 : vector<256xf32> to vector<256x1xf32>
    %23 = arith.maximumf %18, %22 : vector<256x1xf32>
    %24 = arith.subf %18, %23 : vector<256x1xf32>
    %25 = math.exp %24 : vector<256x1xf32>
    %26 = vector.broadcast %23 : vector<256x1xf32> to vector<256x256xf32>
    %27 = arith.subf %20, %26 : vector<256x256xf32>
    %28 = math.exp %27 : vector<256x256xf32>
    %cst_11 = arith.constant dense<0.000000e+00> : vector<256xf32>
    %29 = vector.multi_reduction <add>, %28, %cst_11 [1] : vector<256x256xf32> to vector<256xf32>
    %30 = vector.shape_cast %29 : vector<256xf32> to vector<256x1xf32>
    %31 = arith.addf %25, %30 : vector<256x1xf32>
    %32 = math.log %31 : vector<256x1xf32>
    %33 = arith.addf %23, %32 : vector<256x1xf32>
    %34 = arith.subf %33, %18 : vector<256x1xf32>
    %35 = vector.shape_cast %34 : vector<256x1xf32> to vector<1x256x1xf32>
    %c0_12 = arith.constant 0 : index
    %c0_13 = arith.constant 0 : index
    %c0_14 = arith.constant 0 : index
    %36 = vector.load %arg4[%c0_12, %c0_13, %c0_14] : memref<1x256x1xf32, #tpu.memory_space<vmem>>, vector<1x256x1xf32>
    tpu.vector_store %arg4[%c0_12, %c0_13, %c0_14], %35 {strides = array<i32>} : memref<1x256x1xf32, #tpu.memory_space<vmem>>, vector<1x256x1xf32>,
    return
  }
  func.func @transform_0(%arg0: i32, %arg1: i32) -> (i32, i32, i32) {
    %c0_i32 = arith.constant 0 : i32
    %c0_i32_0 = arith.constant 0 : i32
    return %arg0, %arg1, %c0_i32 : i32, i32, i32
  }
  func.func @transform_1(%arg0: i32, %arg1: i32) -> (i32, i32, i32) {
    %c0_i32 = arith.constant 0 : i32
    %c0_i32_0 = arith.constant 0 : i32
    %c0_i32_1 = arith.constant 0 : i32
    return %arg0, %c0_i32, %c0_i32_0 : i32, i32, i32
  }
  func.func @transform_2(%arg0: i32, %arg1: i32) -> (i32, i32, i32) {
    %c0_i32 = arith.constant 0 : i32
    %c0_i32_0 = arith.constant 0 : i32
    return %arg0, %arg1, %c0_i32 : i32, i32, i32
  }
}

</mosaic_0001>

<bundles_post_ra>
// kernel: tpu_custom_call.1
= control target key start
LH: loop header
LB: loop body
LE: loop exit
PB: predicated region body
PF: predicated region fallthrough
CT: control target
= control target key end

     0   :  { %7 = vsyncpa [#allocation3], 0  ;;  %s3593_s0 = inlined_call_operand.hbm [shape: f32[2,256,128], index: 0, kind: input, shape index: {}]   ;;  %s3594_s1 = inlined_call_operand.hbm [shape: f32[2,128,256], index: 1, kind: input, shape index: {}]   ;;  %s3595_s2 = inlined_call_operand.vmem [shape: f32[2,256,1], index: 2, kind: output, shape index: {}]  }
   0x1   :  { %9 = vsyncpa [#allocation3 + $0x1], 0 }
   0x2   :  { %10 = vsyncpa [#allocation5], 0 }
   0x3   :  { %12 = vsyncpa [#allocation5 + $0x1], 0  ;;  %s2357_s9 = smov 0   ;;  %s2359_s10 = smov 0  }
   0x4   :  { %s2361_s11 = smov 0   ;;  %s2363_s12 = smov 0  }
   0x5   :  { %s2365_s13 = smov 0   ;;  %s2367_s14 = smov 0  }
   0x6 LB: > { %s1830_s15 = sadd.s32 4294967295, %s2333_s14   ;;  %s30_s16 = sadd.s32 1, %s2329_s13  ;;  %s2333_s14 = sphi %s2367_s14, %s18_s14   ;;  %s2329_s13 = sphi %s2365_s13, %s3774_s13   ;;  %s2325_s12 = sphi %s2363_s12, %s3773_s12   ;;  %s2321_s11 = sphi %s2361_s11, %s3772_s11   ;;  %s2317_s10 = sphi %s2359_s10, %s3771_s10   ;;  %s2313_s9 = sphi %s2357_s9, %s3770_s9  }
   0x7   : > { %p32_p0 = scmp.ge.s32.totalorder %s30_s16, 2  ;;  %s39_s17 = sadd.s32 1, %s2321_s11 }
   0x8   : > { %p46_p1 = scmp.ne.s32.totalorder %s2321_s11, %s2317_s10  ;;  %p47_p2 = scmp.eq.s32.totalorder %s2333_s14, 0 }
   0x9   : > { %s3776_s16 = smov (%p32_p0, %s30_s16), 0  ;;  %p52_p4 = scmp.ne.s32.totalorder %s2317_s10, %s2313_s9 }
   0xa   : > { %p2393_p3 = por %p47_p2, %p46_p1  ;;  %s34_s19 = ssub.s32 %s2329_s13, %s3776_s16 }
   0xb   : > { %p53_p5 = scmp.eq.s32.totalorder %s1830_s15, 0  ;;  %p37_p6 = scmp.eq.s32.totalorder %s34_s19, 0 }
   0xc   : > { %p1909_p8 = scmp.lt.s32.totalorder %s2333_s14, 2  ;;  %s2409_s22 = sand.u32 1, %s2321_s11  }
   0xd   : > { %p2400_p7 = por %p53_p5, %p52_p4  ;;  %s1847_s23 = sshll.u32 %s2329_s13, 12 }
   0xe   : > { %s2406_s21 = scalar_select %p37_p6, %s2321_s11, %s39_s17  }
   0xf   : > { %s3674_s20 = scalar_select %p2400_p7, 1, 0 }
  0x10   : > { %s1834_s24 = sshll.u32 %s2409_s22, 8  ;;  %s2418_s27 = scalar_lea.hbm %s3593_s0, %s1847_s23 }
  0x11   : > { %s134_s28 = scalar_lea.vmem [#allocation2], %s1834_s24  ;;  %p2424_p9 = pnand %p1909_p8, %p2393_p3 }
  0x12   : > { %s143_s29 = sshll.u32 %s134_s28, 4  ;;  %s131_s3 = scalar_lea.sflag [#allocation3], %s2409_s22  ;;  %s2428_s29 = int_to_ptr.vmem [resolvable:$true] %s143_s29 }
  0x13   : > { %s2219_s4 = scalar_lea.hbm %s2418_s27, 4096  ;;  %p2221_p11 = pneg %p2424_p9 }
  0x14   : > { %p2220_p10 = scmp.ne.s32.totalorder %s2418_s27, %s2219_s4  ;;  %s2224_s7 = scalar_lea.hbm %s3593_s0, 8192 }
  0x15   : > { %p2225_p0 = scmp.lt.u32.totalorder %s2418_s27, %s3593_s0  ;;  %p2226_p1 = scmp.lt.u32.totalorder %s2224_s7, %s2219_s4 }
  0x16   : > { %p2222_p12 = pnand %p2221_p11, %p2220_p10  ;;  %p2228_p3 = scmp.lt.u32.totalorder %s2219_s4, %s2418_s27 }
  0x17   : > { %p2227_p2 = por %p2226_p1, %p2225_p0 }
  0x18   : > { %p2223_p13 = pneg %p2222_p12 }
  0x19   : > { %p2229_p4 = por %p2228_p3, %p2227_p2 }
  0x1b   : > { %p2230_p5 = pnand %p2229_p4, %p2223_p13 }
  0x1d   : > { %2233 = shalt.err (!%p2230_p5)
}
  0x1e   : > { %s2234_s15 = scalar_lea.vmem %s2428_s29, 4096  ;;  %s2335_s17 = smov [#allocation2]  }
  0x1f   : > { %p2235_p6 = scmp.ne.s32.totalorder %s2428_s29, %s2234_s15  ;;  %s2239_s18 = sshll.u32 %s2335_s17, 4  ;;  %s2240_s18 = int_to_ptr.vmem [resolvable:$false] %s2239_s18 }
  0x20   : > { %s2241_s19 = scalar_lea.vmem %s2240_s18, 8192  ;;  %p2242_p12 = scmp.lt.s32.totalorder %s2428_s29, %s2240_s18 }
  0x21   : > { %p2237_p8 = pnand %p2235_p6, %p2221_p11  ;;  %p2243_p0 = scmp.lt.s32.totalorder %s2241_s19, %s2234_s15 }
  0x23   : > { %p2238_p10 = pneg %p2237_p8  ;;  %p2244_p1 = por %p2243_p0, %p2242_p12 }
  0x25   : > { %p2245_p2 = pnand %p2244_p1, %p2238_p10 }
  0x27   : > { %2248 = shalt.err (!%p2245_p2)
}
  0x28   : > { %s2336_s25 = smov 128   ;;  %s2337_s26 = smov 8  }
  0x29   : > { %1905 = dma.hbm_to_vmem [thread:$0]  (!%p2424_p9), %s2418_s27, 4096, %s2428_s29, %s131_s3, %s2336_s25, %s2336_s25, %s2337_s26  }
  0x2a   : > { %p1840_p13 = scmp.ge.s32.totalorder %s2333_s14, 1  ;;  %p172_p3 = scmp.lt.s32.totalorder %s2333_s14, 3 }
  0x2b   : > { %s2469_s6 = scalar_lea.hbm %s3594_s1, %s1847_s23  ;;  %s157_s7 = scalar_lea.vmem [#allocation4], %s1834_s24 }
  0x2c   : > { %p2460_p4 = pnand %p1840_p13, %p172_p3  ;;  %s164_s8 = sshll.u32 %s157_s7, 4  ;;  %s2473_s8 = int_to_ptr.vmem [resolvable:$true] %s164_s8 }
  0x2d   : > { %s154_s27 = scalar_lea.sflag [#allocation5], %s2409_s22  ;;  %s2249_s29 = scalar_lea.hbm %s2469_s6, 4096 }
  0x2e   : > { %p2250_p5 = scmp.ne.s32.totalorder %s2469_s6, %s2249_s29  ;;  %s2254_s23 = scalar_lea.hbm %s3594_s1, 8192 }
  0x2f   : > { %p2255_p10 = scmp.lt.u32.totalorder %s2469_s6, %s3594_s1  ;;  %p2256_p12 = scmp.lt.u32.totalorder %s2254_s23, %s2249_s29 }
  0x30   : > { %p2252_p6 = pnand %p2250_p5, %p2221_p11  ;;  %p2258_p1 = scmp.lt.u32.totalorder %s2249_s29, %s2469_s6 }
  0x31   : > { %p2257_p0 = por %p2256_p12, %p2255_p10 }
  0x32   : > { %p2253_p8 = pneg %p2252_p6 }
  0x33   : > { %p2259_p2 = por %p2258_p1, %p2257_p0 }
  0x35   : > { %p2260_p13 = pnand %p2259_p2, %p2253_p8 }
  0x37   : > { %2263 = shalt.err (!%p2260_p13)
}
  0x38   : > { %s2264_s24 = scalar_lea.vmem %s2473_s8, 4096  ;;  %s2338_s18 = smov [#allocation4]  }
  0x39   : > { %p2265_p3 = scmp.ne.s32.totalorder %s2473_s8, %s2264_s24  ;;  %s2269_s19 = sshll.u32 %s2338_s18, 4  ;;  %s2270_s19 = int_to_ptr.vmem [resolvable:$false] %s2269_s19 }
  0x3a   : > { %s2271_s25 = scalar_lea.vmem %s2270_s19, 8192  ;;  %p2272_p7 = scmp.lt.s32.totalorder %s2473_s8, %s2270_s19 }
  0x3b   : > { %p2267_p5 = pnand %p2265_p3, %p2221_p11  ;;  %p2273_p10 = scmp.lt.s32.totalorder %s2271_s25, %s2264_s24 }
  0x3d   : > { %p2268_p6 = pneg %p2267_p5  ;;  %p2274_p12 = por %p2273_p10, %p2272_p7 }
  0x3f   : > { %p2275_p0 = pnand %p2274_p12, %p2268_p6 }
  0x41   : > { %2278 = shalt.err (!%p2275_p0)
}
  0x42   : > { %s2339_s26 = smov 256   ;;  %s2340_s4 = smov 16  }
  0x43   : > { %1908 = dma.hbm_to_vmem [thread:$0]  (!%p2424_p9), %s2469_s6, 4096, %s2473_s8, %s154_s27, %s2339_s26, %s2339_s26, %s2340_s4  }
  0x44   : > { %176 = sbr.rel (%p2460_p4) target bundleno = 783 (0x30f), region = 28 }
  0x4b   : > { %s178_s5 = sand.u32 1, %s2317_s10   ;;  %p3677_p7 = scmp.ne.s32.totalorder %s3674_s20, 0 }
  0x4c   : > { %s1841_s7 = sshll.u32 %s178_s5, 8  ;;  %s179_s29 = scalar_lea.sflag [#allocation3], %s178_s5 }
  0x4d   : > { %s2504_s3 = scalar_lea.vmem [#allocation2], %s1841_s7 }
  0x4e   : > { %2304 = dma.done.wait (%p3677_p7), %s179_s29, 4096  }
  0x4f   : > { %2306 = vsyncadd (%p3677_p7), %s179_s29, 4294963200  ;;  %s188_s9 = scalar_lea.sflag [#allocation5], %s178_s5  ;;  %s2510_s30 = scalar_lea.vmem [#allocation4], %s1841_s7 }
  0x50   : > { %2308 = dma.done.wait (%p3677_p7), %s188_s9, 4096  }
  0x51   : > { %2310 = vsyncadd (%p3677_p7), %s188_s9, 4294963200  ;;  %v2341_v0 = vmov 0.0   ;;  %v265_v1 = vld [vmem:[%s2510_s30 + $0x8] sm:$0xff]  ;;  %v267_v2 = vld [vmem:[%s2510_s30 + $0x18] sm:$0xff]  ;;  %p223_p9 = scmp.lt.s32.totalorder %s2325_s12, 1 }
  0x52   : > { %360 = vmatprep.mubr.f32.mxu0 %v2341_v0  ;;  %456 = vmatprep.mubr.f32.mxu1 %v2341_v0  ;;  %v264_v3 = vld [vmem:[%s2510_s30] sm:$0xff]  ;;  %v1850_v4 = vpack.c.bf16 %v267_v2, %v265_v1  ;;  %v266_v5 = vld [vmem:[%s2510_s30 + $0x10] sm:$0xff]  ;;  %v269_v6 = vld [vmem:[%s2510_s30 + $0x28] sm:$0xff] }
  0x53   : > { %v271_v7 = vld [vmem:[%s2510_s30 + $0x38] sm:$0xff]  ;;  %v1852_v8 = vpack.c.bf16 %v266_v5, %v264_v3  ;;  %v268_v10 = vld [vmem:[%s2510_s30 + $0x20] sm:$0xff]  ;;  %v270_v11 = vld [vmem:[%s2510_s30 + $0x30] sm:$0xff]  ;;  %s3778_s12 = smov (!%p223_p9, %s2325_s12), 1 }
  0x54   : > { %v1854_v9 = vpack.c.bf16 %v271_v7, %v269_v6  ;;  %v273_v12 = vld [vmem:[%s2510_s30 + $0x48] sm:$0xff]  ;;  %1851 = vmatprep.subr.bf16.mxu0 %v1850_v4  ;;  %1882 = vmatprep.subr.bf16.mxu1 %v1850_v4  ;;  %v275_v13 = vld [vmem:[%s2510_s30 + $0x58] sm:$0xff]  ;;  %v1856_v14 = vpack.c.bf16 %v270_v11, %v268_v10  ;;  %v272_v16 = vld [vmem:[%s2510_s30 + $0x40] sm:$0xff]  ;;  %s1849_s20 = sshll.u32 %s3778_s12, 8 }
  0x55   : > { %1853 = vmatpush1.bf16.msra.mxu0 %v1852_v8  ;;  %1890 = vmatpush1.bf16.msra.mxu1 %v1852_v8  ;;  %v1858_v15 = vpack.c.bf16 %v275_v13, %v273_v12  ;;  %v274_v17 = vld [vmem:[%s2510_s30 + $0x50] sm:$0xff]  ;;  %v277_v18 = vld [vmem:[%s2510_s30 + $0x68] sm:$0xff]  ;;  %v279_v19 = vld [vmem:[%s2510_s30 + $0x78] sm:$0xff]  ;;  %s3404_s6 = scalar_lea.vmem %s3595_s2, %s1849_s20 }
  0x56   : > { %1855 = vmatprep.subr.bf16.mxu0 %v1854_v9  ;;  %1883 = vmatprep.subr.bf16.mxu1 %v1854_v9  ;;  %v1860_v20 = vpack.c.bf16 %v274_v17, %v272_v16  ;;  %v1862_v21 = vpack.c.bf16 %v279_v19, %v277_v18  ;;  %v276_v22 = vld [vmem:[%s2510_s30 + $0x60] sm:$0xff]  ;;  %v278_v23 = vld [vmem:[%s2510_s30 + $0x70] sm:$0xff]  ;;  %v281_v24 = vld [vmem:[%s2510_s30 + $0x88] sm:$0xff]  ;;  %v553_v18 = vlaneseq }
  0x57   : > { %v283_v25 = vld [vmem:[%s2510_s30 + $0x98] sm:$0xff]  ;;  %v1864_v26 = vpack.c.bf16 %v278_v23, %v276_v22  ;;  %v280_v28 = vld [vmem:[%s2510_s30 + $0x80] sm:$0xff]  ;;  %v282_v29 = vld [vmem:[%s2510_s30 + $0x90] sm:$0xff] }
  0x58   : > { %v1866_v27 = vpack.c.bf16 %v283_v25, %v281_v24  ;;  %v285_v30 = vld [vmem:[%s2510_s30 + $0xa8] sm:$0xff]  ;;  %v287_v31 = vld [vmem:[%s2510_s30 + $0xb8] sm:$0xff]  ;;  %v1868_v32 = vpack.c.bf16 %v282_v29, %v280_v28  ;;  %v284_v34 = vld [vmem:[%s2510_s30 + $0xa0] sm:$0xff]  ;;  %v2612_v19 = vshrl.u32 %v553_v18, 7 }
  0x59   : > { %1857 = vmatpush1.bf16.msra.mxu0 %v1856_v14  ;;  %1891 = vmatpush1.bf16.msra.mxu1 %v1856_v14  ;;  %v1870_v33 = vpack.c.bf16 %v287_v31, %v285_v30  ;;  %v286_v35 = vld [vmem:[%s2510_s30 + $0xb0] sm:$0xff]  ;;  %v289_v36 = vld [vmem:[%s2510_s30 + $0xc8] sm:$0xff]  ;;  %v291_v37 = vld [vmem:[%s2510_s30 + $0xd8] sm:$0xff] }
  0x5a   : > { %1859 = vmatprep.subr.bf16.mxu0 %v1858_v15  ;;  %1884 = vmatprep.subr.bf16.mxu1 %v1858_v15  ;;  %v1872_v38 = vpack.c.bf16 %v286_v35, %v284_v34  ;;  %v1874_v39 = vpack.c.bf16 %v291_v37, %v289_v36  ;;  %v288_v40 = vld [vmem:[%s2510_s30 + $0xc0] sm:$0xff]  ;;  %v290_v41 = vld [vmem:[%s2510_s30 + $0xd0] sm:$0xff]  ;;  %v293_v42 = vld [vmem:[%s2510_s30 + $0xe8] sm:$0xff]  ;;  %v571_v23 = vadd.s32 136, %v2612_v19  ;;  %v556_v29 = vadd.s32 16, %v2612_v19 }
  0x5b   : > { %v295_v43 = vld [vmem:[%s2510_s30 + $0xf8] sm:$0xff]  ;;  %v1876_v44 = vpack.c.bf16 %v290_v41, %v288_v40  ;;  %v292_v46 = vld [vmem:[%s2510_s30 + $0xe0] sm:$0xff]  ;;  %v294_v47 = vld [vmem:[%s2510_s30 + $0xf0] sm:$0xff] }
  0x5c   : > { %v1878_v45 = vpack.c.bf16 %v295_v43, %v293_v42  ;;  %v1880_v48 = vpack.c.bf16 %v294_v47, %v292_v46  ;;  %v232_v49 = vld [vmem:[%s2504_s3] sm:$0xff]  ;;  %v233_v51 = vld [vmem:[%s2504_s3 + $0x8] sm:$0xff]  ;;  %v234_v53 = vld [vmem:[%s2504_s3 + $0x10] sm:$0xff] }
  0x5d   : > { %1861 = vmatpush1.bf16.msra.mxu0 %v1860_v20  ;;  %1892 = vmatpush1.bf16.msra.mxu1 %v1860_v20  ;;  %v248_v50 = vld [vmem:[%s2504_s3 + $0x80] sm:$0xff]  ;;  %v249_v52 = vld [vmem:[%s2504_s3 + $0x88] sm:$0xff]  ;;  %v250_v54 = vld [vmem:[%s2504_s3 + $0x90] sm:$0xff]  ;;  %v2614_v20 = vand.u32 127, %v553_v18 }
  0x5e   : > { %1863 = vmatprep.subr.bf16.mxu0 %v1862_v21  ;;  %1885 = vmatprep.subr.bf16.mxu1 %v1862_v21  ;;  %v235_v55 = vld [vmem:[%s2504_s3 + $0x18] sm:$0xff]  ;;  %v236_v57 = vld [vmem:[%s2504_s3 + $0x20] sm:$0xff]  ;;  %v237_v59 = vld [vmem:[%s2504_s3 + $0x28] sm:$0xff]  ;;  %v570_v21 = vadd.s32 128, %v2612_v19 }
  0x5f   : > { %v251_v56 = vld [vmem:[%s2504_s3 + $0x98] sm:$0xff]  ;;  %v252_v58 = vld [vmem:[%s2504_s3 + $0xa0] sm:$0xff]  ;;  %v253_v60 = vld [vmem:[%s2504_s3 + $0xa8] sm:$0xff]  ;;  %vm623_vm0 = vcmp.eq.s32.totalorder %v2612_v19, %v2614_v20  ;;  %v2620_v22 = vadd.s32 128, %v2614_v20  ;;  %vm627_vm4 = vcmp.eq.s32.totalorder %v556_v29, %v2614_v20 }
  0x60   : > { %v238_v61 = vld [vmem:[%s2504_s3 + $0x30] sm:$0xff]  ;;  %v239_v63 = vld [vmem:[%s2504_s3 + $0x38] sm:$0xff]  ;;  %v240_v2 = vld [vmem:[%s2504_s3 + $0x40] sm:$0xff] }
  0x61   : > { %1865 = vmatpush1.bf16.msra.mxu0 %v1864_v26  ;;  %1893 = vmatpush1.bf16.msra.mxu1 %v1864_v26  ;;  %v254_v62 = vld [vmem:[%s2504_s3 + $0xb0] sm:$0xff]  ;;  %v255_v1 = vld [vmem:[%s2504_s3 + $0xb8] sm:$0xff]  ;;  %v256_v3 = vld [vmem:[%s2504_s3 + $0xc0] sm:$0xff]  ;;  %vm656_vm1 = vcmp.eq.s32.totalorder %v570_v21, %v2620_v22  ;;  %vm658_vm2 = vcmp.eq.s32.totalorder %v571_v23, %v2620_v22 }
  0x62   : > { %1867 = vmatprep.subr.bf16.mxu0 %v1866_v27  ;;  %1886 = vmatprep.subr.bf16.mxu1 %v1866_v27  ;;  %v241_v4 = vld [vmem:[%s2504_s3 + $0x48] sm:$0xff]  ;;  %v242_v6 = vld [vmem:[%s2504_s3 + $0x50] sm:$0xff]  ;;  %v243_v8 = vld [vmem:[%s2504_s3 + $0x58] sm:$0xff] }
  0x63   : > { %v257_v5 = vld [vmem:[%s2504_s3 + $0xc8] sm:$0xff]  ;;  %v258_v7 = vld [vmem:[%s2504_s3 + $0xd0] sm:$0xff]  ;;  %v259_v9 = vld [vmem:[%s2504_s3 + $0xd8] sm:$0xff] }
  0x64   : > { %v244_v10 = vld [vmem:[%s2504_s3 + $0x60] sm:$0xff]  ;;  %v245_v12 = vld [vmem:[%s2504_s3 + $0x68] sm:$0xff]  ;;  %v246_v14 = vld [vmem:[%s2504_s3 + $0x70] sm:$0xff] }
  0x65   : > { %1869 = vmatpush1.bf16.msra.mxu0 %v1868_v32  ;;  %1894 = vmatpush1.bf16.msra.mxu1 %v1868_v32  ;;  %v260_v11 = vld [vmem:[%s2504_s3 + $0xe0] sm:$0xff]  ;;  %v261_v13 = vld [vmem:[%s2504_s3 + $0xe8] sm:$0xff]  ;;  %v262_v15 = vld [vmem:[%s2504_s3 + $0xf0] sm:$0xff] }
  0x66   : > { %1871 = vmatprep.subr.bf16.mxu0 %v1870_v33  ;;  %1887 = vmatprep.subr.bf16.mxu1 %v1870_v33  ;;  %v247_v16 = vld [vmem:[%s2504_s3 + $0x78] sm:$0xff] }
  0x67   : > { %v263_v17 = vld [vmem:[%s2504_s3 + $0xf8] sm:$0xff] }
  0x69   : > { %1873 = vmatpush1.bf16.msra.mxu0 %v1872_v38  ;;  %1895 = vmatpush1.bf16.msra.mxu1 %v1872_v38 }
  0x6a   : > { %1875 = vmatprep.subr.bf16.mxu0 %v1874_v39  ;;  %1888 = vmatprep.subr.bf16.mxu1 %v1874_v39 }
  0x6d   : > { %1877 = vmatpush1.bf16.msra.mxu0 %v1876_v44  ;;  %1896 = vmatpush1.bf16.msra.mxu1 %v1876_v44 }
  0x6e   : > { %1879 = vmatprep.subr.bf16.mxu0 %v1878_v45  ;;  %1889 = vmatprep.subr.bf16.mxu1 %v1878_v45 }
  0x71   : > { %1881 = vmatpush1.bf16.msra.mxu0 %v1880_v48  ;;  %1897 = vmatpush1.bf16.msra.mxu1 %v1880_v48 }
  0x74   : > { %361 = vmatmul.mubr.f32.vlgmr.msra.gmra.mrb[0].mxu0 %v232_v49  ;;  %457 = vmatmul.mubr.f32.vlgmr.msra.gmra.mrb[0].mxu1 %v248_v50 }
  0x75   : > { %366 = vmatprep.mubr.f32.mxu0 %v2341_v0  ;;  %462 = vmatprep.mubr.f32.mxu1 %v2341_v0 }
  0x78   : > { %367 = vmatmul.mubr.f32.gmra.mrb[2].mxu0 %v233_v51  ;;  %463 = vmatmul.mubr.f32.gmra.mrb[2].mxu1 %v249_v52 }
  0x79   : > { %372 = vmatprep.mubr.f32.mxu0 %v2341_v0  ;;  %468 = vmatprep.mubr.f32.mxu1 %v2341_v0 }
  0x7c   : > { %373 = vmatmul.mubr.f32.gmra.mrb[4].mxu0 %v234_v53  ;;  %469 = vmatmul.mubr.f32.gmra.mrb[4].mxu1 %v250_v54  ;;  %v572_v54 = vadd.s32 144, %v2612_v19 }
  0x7d   : > { %378 = vmatprep.mubr.f32.mxu0 %v2341_v0  ;;  %474 = vmatprep.mubr.f32.mxu1 %v2341_v0 }
  0x7e   : > { %vm660_vm5 = vcmp.eq.s32.totalorder %v572_v54, %v2620_v22 }
  0x80   : > { %379 = vmatmul.mubr.f32.gmra.mrb[6].mxu0 %v235_v55  ;;  %475 = vmatmul.mubr.f32.gmra.mrb[6].mxu1 %v251_v56 }
  0x81   : > { %384 = vmatprep.mubr.f32.mxu0 %v2341_v0  ;;  %480 = vmatprep.mubr.f32.mxu1 %v2341_v0 }
  0x84   : > { %385 = vmatmul.mubr.f32.gmra.mrb[8].mxu0 %v236_v57  ;;  %481 = vmatmul.mubr.f32.gmra.mrb[8].mxu1 %v252_v58 }
  0x85   : > { %390 = vmatprep.mubr.f32.mxu0 %v2341_v0  ;;  %486 = vmatprep.mubr.f32.mxu1 %v2341_v0 }
  0x88   : > { %391 = vmatmul.mubr.f32.gmra.mrb[10].mxu0 %v237_v59  ;;  %487 = vmatmul.mubr.f32.gmra.mrb[10].mxu1 %v253_v60  ;;  %v557_v59 = vadd.s32 24, %v2612_v19 }
  0x89   : > { %396 = vmatprep.mubr.f32.mxu0 %v2341_v0  ;;  %492 = vmatprep.mubr.f32.mxu1 %v2341_v0 }
  0x8a   : > { %vm629_vm6 = vcmp.eq.s32.totalorder %v557_v59, %v2614_v20 }
  0x8c   : > { %397 = vmatmul.mubr.f32.gmra.mrb[12].mxu0 %v238_v61  ;;  %493 = vmatmul.mubr.f32.gmra.mrb[12].mxu1 %v254_v62 }
  0x8d   : > { %402 = vmatprep.mubr.f32.mxu0 %v2341_v0  ;;  %498 = vmatprep.mubr.f32.mxu1 %v2341_v0 }
  0x90   : > { %403 = vmatmul.mubr.f32.gmra.mrb[14].mxu0 %v239_v63  ;;  %499 = vmatmul.mubr.f32.gmra.mrb[14].mxu1 %v255_v1 }
  0x91   : > { %408 = vmatprep.mubr.f32.mxu0 %v2341_v0  ;;  %504 = vmatprep.mubr.f32.mxu1 %v2341_v0 }
  0x94   : > { %409 = vmatmul.mubr.f32.gmra.mrb[16].mxu0 %v240_v2  ;;  %505 = vmatmul.mubr.f32.gmra.mrb[16].mxu1 %v256_v3 }
  0x95   : > { %414 = vmatprep.mubr.f32.mxu0 %v2341_v0  ;;  %510 = vmatprep.mubr.f32.mxu1 %v2341_v0 }
  0x98   : > { %415 = vmatmul.mubr.f32.gmra.mrb[18].mxu0 %v241_v4  ;;  %511 = vmatmul.mubr.f32.gmra.mrb[18].mxu1 %v257_v5  ;;  %v573_v4 = vadd.s32 152, %v2612_v19 }
  0x99   : > { %420 = vmatprep.mubr.f32.mxu0 %v2341_v0  ;;  %516 = vmatprep.mubr.f32.mxu1 %v2341_v0 }
  0x9a   : > { %vm662_vm7 = vcmp.eq.s32.totalorder %v573_v4, %v2620_v22 }
  0x9c   : > { %421 = vmatmul.mubr.f32.gmra.mrb[20].mxu0 %v242_v6  ;;  %517 = vmatmul.mubr.f32.gmra.mrb[20].mxu1 %v258_v7 }
  0x9d   : > { %426 = vmatprep.mubr.f32.mxu0 %v2341_v0  ;;  %522 = vmatprep.mubr.f32.mxu1 %v2341_v0 }
  0xa0   : > { %427 = vmatmul.mubr.f32.gmra.mrb[22].mxu0 %v243_v8  ;;  %523 = vmatmul.mubr.f32.gmra.mrb[22].mxu1 %v259_v9 }
  0xa1   : > { %432 = vmatprep.mubr.f32.mxu0 %v2341_v0  ;;  %528 = vmatprep.mubr.f32.mxu1 %v2341_v0 }
  0xa4   : > { %433 = vmatmul.mubr.f32.gmra.mrb[24].mxu0 %v244_v10  ;;  %529 = vmatmul.mubr.f32.gmra.mrb[24].mxu1 %v260_v11 }
  0xa5   : > { %438 = vmatprep.mubr.f32.mxu0 %v2341_v0  ;;  %534 = vmatprep.mubr.f32.mxu1 %v2341_v0 }
  0xa8   : > { %439 = vmatmul.mubr.f32.gmra.mrb[26].mxu0 %v245_v12  ;;  %535 = vmatmul.mubr.f32.gmra.mrb[26].mxu1 %v261_v13 }
  0xa9   : > { %444 = vmatprep.mubr.f32.mxu0 %v2341_v0  ;;  %540 = vmatprep.mubr.f32.mxu1 %v2341_v0 }
  0xac   : > { %445 = vmatmul.mubr.f32.gmra.mrb[28].mxu0 %v246_v14  ;;  %541 = vmatmul.mubr.f32.gmra.mrb[28].mxu1 %v262_v15 }
  0xad   : > { %450 = vmatprep.mubr.f32.mxu0 %v2341_v0  ;;  %546 = vmatprep.mubr.f32.mxu1 %v2341_v0  ;;  %v555_v0 = vadd.s32 8, %v2612_v19 }
  0xaf   : > { %vm625_vm3 = vcmp.eq.s32.totalorder %v555_v0, %v2614_v20  ;;  %v558_v0 = vadd.s32 32, %v2612_v19 }
  0xb0   : > { %451 = vmatmul.mubr.f32.gmra.mrb[30].mxu0 %v247_v16  ;;  %547 = vmatmul.mubr.f32.gmra.mrb[30].mxu1 %v263_v17 }
  0xb1   : > { %vm631_vm8 = vcmp.eq.s32.totalorder %v558_v0, %v2614_v20 }
 0x147   : > { %v362_v24 = vpop.f32.mrb[0].mxu0  ;;  %v458_v25 = vpop.f32.mrb[0].mxu1 }
 0x148   : > { %v364_v26 = vpop.f32.mrb[1].mxu0  ;;  %v460_v27 = vpop.f32.mrb[1].mxu1  ;;  %v687_v28 = vsel %vm623_vm0, %v362_v24, 0.0  ;;  %v847_v30 = vsel %vm623_vm0, -10.0, %v362_v24  ;;  %v2661_v60 = vmul.f32 14.285714, %v458_v25 }
 0x149   : > { %752 = vadd.xlane.f32.xlu0 %v687_v28  ;;  %v720_v35 = vsel %vm656_vm1, %v460_v27, 0.0  ;;  %v2635_v38 = vmul.f32 14.285714, %v364_v26  ;;  %v2637_v39 = vmul.f32 14.285714, %v847_v30  ;;  %v880_v41 = vsel %vm656_vm1, -10.0, %v460_v27 }
 0x14a   : > { %v2651_v50 = vmul.f32 14.285714, %v880_v41 }
 0x14b   : > { %v368_v31 = vpop.f32.mrb[2].mxu0  ;;  %v464_v32 = vpop.f32.mrb[2].mxu1  ;;  %v1007_v51 = vmax.f32 %v2637_v39, %v2635_v38 }
 0x14c   : > { %v370_v33 = vpop.f32.mrb[3].mxu0  ;;  %v466_v34 = vpop.f32.mrb[3].mxu1  ;;  %v849_v37 = vsel %vm625_vm3, -10.0, %v368_v31  ;;  %v689_v45 = vsel %vm625_vm3, %v368_v31, 0.0  ;;  %v2663_v61 = vmul.f32 14.285714, %v464_v32  ;;  %v1055_v62 = vmax.f32 %v2661_v60, %v2651_v50 }
 0x14d   : > { %800 = vadd.xlane.f32.xlu0 %v720_v35  ;;  %v722_v36 = vsel %vm658_vm2, %v466_v34, 0.0  ;;  %v2639_v40 = vmul.f32 14.285714, %v370_v33  ;;  %v2645_v46 = vmul.f32 14.285714, %v849_v37  ;;  %v882_v49 = vsel %vm658_vm2, -10.0, %v466_v34 }
 0x14e   : > { %803 = vadd.xlane.f32.xlu1 %v722_v36  ;;  %v2656_v55 = vmul.f32 14.285714, %v882_v49  ;;  %v574_v32 = vadd.s32 160, %v2612_v19  ;;  %v559_v33 = vadd.s32 40, %v2612_v19 }
 0x14f   : > { %v374_v42 = vpop.f32.mrb[4].mxu0  ;;  %v470_v43 = vpop.f32.mrb[4].mxu1  ;;  %v1010_v56 = vmax.f32 %v2645_v46, %v2639_v40 }
 0x150   : > { %v376_v44 = vpop.f32.mrb[5].mxu0  ;;  %v691_v47 = vsel %vm627_vm4, %v374_v42, 0.0  ;;  %v472_v48 = vpop.f32.mrb[5].mxu1  ;;  %v851_v2 = vsel %vm627_vm4, -10.0, %v374_v42  ;;  %v1058_v3 = vmax.f32 %v2663_v61, %v2656_v55  ;;  %v2695_v17 = vmul.f32 14.285714, %v470_v43 }
 0x151   : > { %755 = vadd.xlane.f32.xlu0 %v689_v45  ;;  %v2676_v7 = vmul.f32 14.285714, %v376_v44  ;;  %v724_v8 = vsel %vm660_vm5, %v472_v48, 0.0  ;;  %v2680_v9 = vmul.f32 14.285714, %v851_v2  ;;  %v884_v13 = vsel %vm660_vm5, -10.0, %v472_v48 }
 0x152   : > { %758 = vadd.xlane.f32.xlu1 %v691_v47  ;;  %v2697_v18 = vmul.f32 14.285714, %v884_v13  ;;  %vm664_vm9 = vcmp.eq.s32.totalorder %v574_v32, %v2620_v22  ;;  %vm633_vm10 = vcmp.eq.s32.totalorder %v559_v33, %v2614_v20  ;;  %v560_v13 = vadd.s32 48, %v2612_v19 }
 0x153   : > { %v380_v52 = vpop.f32.mrb[6].mxu0  ;;  %v476_v53 = vpop.f32.mrb[6].mxu1  ;;  %v1013_v21 = vmax.f32 %v2680_v9, %v2676_v7  ;;  %v561_v32 = vadd.s32 56, %v2612_v19 }
 0x154   : > { %v382_v57 = vpop.f32.mrb[7].mxu0  ;;  %v478_v58 = vpop.f32.mrb[7].mxu1  ;;  %v693_v10 = vsel %vm629_vm6, %v380_v52, 0.0  ;;  %v853_v16 = vsel %vm629_vm6, -10.0, %v380_v52  ;;  %v1061_v31 = vmax.f32 %v2695_v17, %v2697_v18  ;;  %v2727_v36 = vmul.f32 14.285714, %v476_v53 }
 0x155   : > { %1008 = vmax.xlane.f32.xlu0 %v1007_v51  ;;  %v726_v23 = vsel %vm662_vm7, %v478_v58, 0.0  ;;  %v2708_v26 = vmul.f32 14.285714, %v382_v57  ;;  %v2710_v27 = vmul.f32 14.285714, %v853_v16  ;;  %v886_v30 = vsel %vm662_vm7, -10.0, %v478_v58 }
 0x156   : > { %1011 = vmax.xlane.f32.xlu1 %v1010_v56  ;;  %v2729_v37 = vmul.f32 14.285714, %v886_v30  ;;  %v575_v51 = vadd.s32 168, %v2612_v19  ;;  %vm635_vm12 = vcmp.eq.s32.totalorder %v560_v13, %v2614_v20  ;;  %vm637_vm14 = vcmp.eq.s32.totalorder %v561_v32, %v2614_v20 }
 0x157   : > { %v386_v63 = vpop.f32.mrb[8].mxu0  ;;  %v2668_v1 = vpop.f32.mrb[8].mxu1  ;;  %v1016_v41 = vmax.f32 %v2710_v27, %v2708_v26 }
 0x158   : > { %v388_v5 = vpop.f32.mrb[9].mxu0  ;;  %v484_v6 = vpop.f32.mrb[9].mxu1  ;;  %v695_v44 = vsel %vm631_vm8, %v386_v63, 0.0  ;;  %v855_v48 = vsel %vm631_vm8, -10.0, %v386_v63  ;;  %v1064_v49 = vmax.f32 %v2727_v36, %v2729_v37  ;;  %vm666_vm11 = vcmp.eq.s32.totalorder %v575_v51, %v2620_v22 }
 0x159   : > { %1056 = vmax.xlane.f32.xlu0 %v1055_v62  ;;  %v2754_v54 = vmul.f32 14.285714, %v388_v5  ;;  %v728_v56 = vsel %vm664_vm9, %v484_v6, 0.0  ;;  %v2758_v57 = vmul.f32 14.285714, %v855_v48  ;;  %v888_v63 = vsel %vm664_vm9, -10.0, %v484_v6 }
 0x15a   : > { %1059 = vmax.xlane.f32.xlu1 %v1058_v3  ;;  %v2776_v5 = vmul.f32 14.285714, %v2668_v1 }
 0x15b   : > { %v392_v11 = vpop.f32.mrb[10].mxu0  ;;  %v2684_v12 = vpop.f32.mrb[10].mxu1  ;;  %3678 = vst [vmem:[#allocation8_spill] sm:$0xff] %v2754_v54  ;;  %3679 = vst [vmem:[#allocation9_spill] sm:$0xff] %v2758_v57 }
 0x15c   : > { %v2689_v14 = vpop.f32.mrb[11].mxu0  ;;  %v2691_v15 = vpop.f32.mrb[11].mxu1  ;;  %v697_v58 = vsel %vm633_vm10, %v392_v11, 0.0  ;;  %v857_v4 = vsel %vm633_vm10, -10.0, %v392_v11  ;;  %3680 = vst [vmem:[#allocation10_spill] sm:$0xff] %v2776_v5 }
 0x15d   : > { %806 = vadd.xlane.f32.xlu0 %v724_v8  ;;  %v2778_v8 = vmul.f32 14.285714, %v888_v63  ;;  %v730_v6 = vsel %vm666_vm11, %v2691_v15, 0.0  ;;  %v2791_v11 = vmul.f32 14.285714, %v2689_v14  ;;  %v890_v30 = vsel %vm666_vm11, -10.0, %v2691_v15 }
 0x15e   : > { %761 = vadd.xlane.f32.xlu1 %v693_v10  ;;  %v1019_v10 = vmax.f32 %v2758_v57, %v2754_v54  ;;  %v2793_v1 = vmul.f32 14.285714, %v857_v4  ;;  %v576_v14 = vadd.s32 176, %v2612_v19  ;;  %v2814_v48 = vmul.f32 14.285714, %v890_v30 }
 0x15f   : > { %v2704_v24 = vpop.f32.mrb[12].mxu0  ;;  %v2706_v25 = vpop.f32.mrb[12].mxu1  ;;  %3681 = vst [vmem:[#allocation11_spill] sm:$0xff] %v2778_v8  ;;  %3682 = vst [vmem:[#allocation12_spill] sm:$0xff] %v2791_v11 }
 0x160   : > { %v2712_v28 = vpop.f32.mrb[13].mxu0  ;;  %v2714_v29 = vpop.f32.mrb[13].mxu1  ;;  %3683 = vst [vmem:[#allocation13_spill] sm:$0xff] %v2793_v1  ;;  %3685 = vst [vmem:[#allocation15_spill] sm:$0xff] %v2814_v48  ;;  %v1022_v15 = vmax.f32 %v2793_v1, %v2791_v11  ;;  %vm668_vm13 = vcmp.eq.s32.totalorder %v576_v14, %v2620_v22  ;;  %v859_v63 = vsel %vm635_vm12, -10.0, %v2704_v24 }
 0x161   : > { %1014 = vmax.xlane.f32.xlu0 %v1013_v21  ;;  %v2847_v13 = vmul.f32 14.285714, %v859_v63  ;;  %v2868_v11 = vmul.f32 14.285714, %v2706_v25 }
 0x162   : > { %809 = vadd.xlane.f32.xlu1 %v726_v23 }
 0x163   : > { %v2723_v34 = vpop.f32.mrb[14].mxu0  ;;  %v2725_v35 = vpop.f32.mrb[14].mxu1  ;;  %3687 = vst [vmem:[#allocation17_spill] sm:$0xff] %v2847_v13 }
 0x164   : > { %v2733_v42 = vpop.f32.mrb[15].mxu0  ;;  %v2735_v43 = vpop.f32.mrb[15].mxu1  ;;  %v861_v63 = vsel %vm637_vm14, -10.0, %v2723_v34 }
 0x165   : > { %1062 = vmax.xlane.f32.xlu0 %v1061_v31  ;;  %v1067_v31 = vmax.f32 %v2776_v5, %v2778_v8  ;;  %v562_v8 = vadd.s32 64, %v2612_v19  ;;  %v2885_v25 = vmul.f32 14.285714, %v861_v63  ;;  %v563_v63 = vadd.s32 72, %v2612_v19 }
 0x166   : > { %1017 = vmax.xlane.f32.xlu1 %v1016_v41 }
 0x167   : > { %v2740_v45 = vpop.f32.mrb[16].mxu0  ;;  %v2742_v47 = vpop.f32.mrb[16].mxu1  ;;  %vm639_vm0 = vcmp.eq.s32.totalorder %v562_v8, %v2614_v20  ;;  %vm641_vm2 = vcmp.eq.s32.totalorder %v563_v63, %v2614_v20 }
 0x168   : > { %v2750_v52 = vpop.f32.mrb[17].mxu0  ;;  %v2752_v53 = vpop.f32.mrb[17].mxu1  ;;  %v703_v8 = vsel %vm639_vm0, %v2740_v45, 0.0 }
 0x169   : > { %764 = vadd.xlane.f32.xlu0 %v695_v44  ;;  %v2812_v44 = vmul.f32 14.285714, %v2684_v12 }
 0x16a   : > { %1065 = vmax.xlane.f32.xlu1 %v1064_v49 }
 0x16b   : > { %v2762_v59 = vpop.f32.mrb[18].mxu0  ;;  %v2764_v62 = vpop.f32.mrb[18].mxu1  ;;  %3684 = vst [vmem:[#allocation14_spill] sm:$0xff] %v2812_v44  ;;  %v1070_v4 = vmax.f32 %v2812_v44, %v2814_v48 }
 0x16c   : > { %v2769_v2 = vpop.f32.mrb[19].mxu0  ;;  %v2771_v3 = vpop.f32.mrb[19].mxu1  ;;  %v865_v63 = vsel %vm641_vm2, -10.0, %v2762_v59 }
 0x16d   : > { %812 = vadd.xlane.f32.xlu0 %v728_v56  ;;  %v699_v56 = vsel %vm635_vm12, %v2704_v24, 0.0  ;;  %v732_v24 = vsel %vm668_vm13, %v2714_v29, 0.0 }
 0x16e   : > { %767 = vadd.xlane.f32.xlu1 %v697_v58 }
 0x16f   : > { %v2786_v16 = vpop.f32.mrb[20].mxu0  ;;  %v2788_v21 = vpop.f32.mrb[20].mxu1 }
 0x170   : > { %v2795_v23 = vpop.f32.mrb[21].mxu0  ;;  %v2797_v0 = vpop.f32.mrb[21].mxu1 }
 0x171   : > { %1020 = vmax.xlane.f32.xlu0 %v1019_v10  ;;  %v577_v10 = vadd.s32 184, %v2612_v19 }
 0x172   : > { %815 = vadd.xlane.f32.xlu1 %v730_v6 }
 0x173   : > { %v2807_v33 = vpop.f32.mrb[22].mxu0  ;;  %v2809_v41 = vpop.f32.mrb[22].mxu1  ;;  %vm670_vm15 = vcmp.eq.s32.totalorder %v577_v10, %v2620_v22 }
 0x174   : > { %v2818_v49 = vpop.f32.mrb[23].mxu0  ;;  %v2820_v51 = vpop.f32.mrb[23].mxu1  ;;  %v734_v14 = vsel %vm670_vm15, %v2735_v43, 0.0 }
 0x175   : > { %1068 = vmax.xlane.f32.xlu0 %v1067_v31  ;;  %v2842_v31 = vmul.f32 14.285714, %v2712_v28  ;;  %v892_v28 = vsel %vm668_vm13, -10.0, %v2714_v29 }
 0x176   : > { %1023 = vmax.xlane.f32.xlu1 %v1022_v15  ;;  %v701_v15 = vsel %vm637_vm14, %v2723_v34, 0.0  ;;  %v2870_v1 = vmul.f32 14.285714, %v892_v28  ;;  %v2883_v34 = vmul.f32 14.285714, %v2733_v42  ;;  %v894_v28 = vsel %vm670_vm15, -10.0, %v2735_v43 }
 0x177   : > { %v2826_v58 = vpop.f32.mrb[24].mxu0  ;;  %v2828_v12 = vpop.f32.mrb[24].mxu1  ;;  %3686 = vst [vmem:[#allocation16_spill] sm:$0xff] %v2842_v31  ;;  %v1025_v29 = vmax.f32 %v2847_v13, %v2842_v31  ;;  %v578_v42 = vadd.s32 192, %v2612_v19  ;;  %v2906_v57 = vmul.f32 14.285714, %v894_v28 }
 0x178   : > { %v2837_v6 = vpop.f32.mrb[25].mxu0  ;;  %v2839_v30 = vpop.f32.mrb[25].mxu1  ;;  %3688 = vst [vmem:[#allocation18_spill] sm:$0xff] %v2870_v1  ;;  %3689 = vst [vmem:[#allocation19_spill] sm:$0xff] %v2883_v34  ;;  %v1073_v31 = vmax.f32 %v2868_v11, %v2870_v1  ;;  %v1028_v43 = vmax.f32 %v2885_v25, %v2883_v34  ;;  %v863_v1 = vsel %vm639_vm0, -10.0, %v2740_v45  ;;  %v579_v28 = vadd.s32 200, %v2612_v19 }
 0x179   : > { %770 = vadd.xlane.f32.xlu0 %v699_v56  ;;  %3690 = vst [vmem:[#allocation20_spill] sm:$0xff] %v2906_v57  ;;  %vm672_vm1 = vcmp.eq.s32.totalorder %v578_v42, %v2620_v22  ;;  %v705_v42 = vsel %vm641_vm2, %v2762_v59, 0.0  ;;  %vm1679_vm0 = vcmask 7168  }
 0x17a   : > { %1071 = vmax.xlane.f32.xlu1 %v1070_v4  ;;  %v736_v34 = vsel %vm672_vm1, %v2752_v53, 0.0  ;;  %v896_v45 = vsel %vm672_vm1, -10.0, %v2752_v53  ;;  %vm674_vm3 = vcmp.eq.s32.totalorder %v579_v28, %v2620_v22  ;;  %v2941_v53 = vmul.f32 14.285714, %v2769_v2 }
 0x17b   : > { %v2852_v48 = vpop.f32.mrb[26].mxu0  ;;  %v2854_v44 = vpop.f32.mrb[26].mxu1  ;;  %v2943_v28 = vmul.f32 14.285714, %v865_v63  ;;  %v898_v59 = vsel %vm674_vm3, -10.0, %v2771_v3  ;;  %v565_v63 = vadd.s32 88, %v2612_v19 }
 0x17c   : > { %v2860_v56 = vpop.f32.mrb[27].mxu0  ;;  %v2862_v4 = vpop.f32.mrb[27].mxu1 }
 0x17d   : > { %818 = vadd.xlane.f32.xlu0 %v732_v24  ;;  %v1034_v2 = vmax.f32 %v2943_v28, %v2941_v53  ;;  %vm645_vm6 = vcmp.eq.s32.totalorder %v565_v63, %v2614_v20  ;;  %v566_v63 = vadd.s32 96, %v2612_v19 }
 0x17e   : > { %773 = vadd.xlane.f32.xlu1 %v701_v15 }
 0x17f   : > { %v2878_v24 = vpop.f32.mrb[28].mxu0  ;;  %v2880_v5 = vpop.f32.mrb[28].mxu1  ;;  %vm647_vm8 = vcmp.eq.s32.totalorder %v566_v63, %v2614_v20 }
 0x180   : > { %v2887_v32 = vpop.f32.mrb[29].mxu0  ;;  %v2889_v15 = vpop.f32.mrb[29].mxu1  ;;  %v871_v63 = vsel %vm647_vm8, -10.0, %v2826_v58 }
 0x181   : > { %1026 = vmax.xlane.f32.xlu0 %v1025_v29  ;;  %v2904_v29 = vmul.f32 14.285714, %v2725_v35 }
 0x182   : > { %821 = vadd.xlane.f32.xlu1 %v734_v14 }
 0x183   : > { %v2899_v13 = vpop.f32.mrb[30].mxu0  ;;  %v2901_v54 = vpop.f32.mrb[30].mxu1  ;;  %v1076_v35 = vmax.f32 %v2904_v29, %v2906_v57  ;;  %v2935_v57 = vmul.f32 14.285714, %v896_v45  ;;  %v2953_v45 = vmul.f32 14.285714, %v898_v59 }
 0x184   : > { %v2910_v10 = vpop.f32.mrb[31].mxu0  ;;  %v2912_v14 = vpop.f32.mrb[31].mxu1  ;;  %v2967_v59 = vmul.f32 14.285714, %v2795_v23 }
 0x185   : > { %1074 = vmax.xlane.f32.xlu0 %v1073_v31  ;;  %v2923_v31 = vmul.f32 14.285714, %v2750_v52 }
 0x186   : > { %1029 = vmax.xlane.f32.xlu1 %v1028_v43  ;;  %v2925_v43 = vmul.f32 14.285714, %v863_v1  ;;  %v738_v1 = vsel %vm674_vm3, %v2771_v3, 0.0 }
 0x188   : > { %v1031_v52 = vmax.f32 %v2925_v43, %v2923_v31 }
 0x189   : > { %776 = vadd.xlane.f32.xlu0 %v703_v8  ;;  %v564_v8 = vadd.s32 80, %v2612_v19 }
 0x18a   : > { %1077 = vmax.xlane.f32.xlu1 %v1076_v35  ;;  %v2933_v35 = vmul.f32 14.285714, %v2742_v47 }
 0x18b   : > { %vm643_vm4 = vcmp.eq.s32.totalorder %v564_v8, %v2614_v20 }
 0x18c   : > { %v1079_v47 = vmax.f32 %v2933_v35, %v2935_v57  ;;  %v707_v3 = vsel %vm643_vm4, %v2786_v16, 0.0  ;;  %v867_v8 = vsel %vm643_vm4, -10.0, %v2786_v16 }
 0x18d   : > { %824 = vadd.xlane.f32.xlu0 %v736_v34  ;;  %v580_v34 = vadd.s32 208, %v2612_v19 }
 0x18e   : > { %779 = vadd.xlane.f32.xlu1 %v705_v42  ;;  %v2951_v42 = vmul.f32 14.285714, %v2764_v62  ;;  %v581_v62 = vadd.s32 216, %v2612_v19 }
 0x18f   : > { %vm676_vm5 = vcmp.eq.s32.totalorder %v580_v34, %v2620_v22  ;;  %v709_v34 = vsel %vm645_vm6, %v2807_v33, 0.0 }
 0x190   : > { %v900_v16 = vsel %vm676_vm5, -10.0, %v2797_v0  ;;  %vm678_vm7 = vcmp.eq.s32.totalorder %v581_v62, %v2620_v22 }
 0x191   : > { %1032 = vmax.xlane.f32.xlu0 %v1031_v52  ;;  %v1082_v52 = vmax.f32 %v2951_v42, %v2953_v45 }
 0x192   : > { %827 = vadd.xlane.f32.xlu1 %v738_v1  ;;  %v740_v1 = vsel %vm676_vm5, %v2797_v0, 0.0  ;;  %v2985_v0 = vmul.f32 14.285714, %v2818_v49 }
 0x195   : > { %1080 = vmax.xlane.f32.xlu0 %v1079_v47  ;;  %v2969_v47 = vmul.f32 14.285714, %v867_v8  ;;  %v742_v8 = vsel %vm678_vm7, %v2820_v51, 0.0 }
 0x196   : > { %1035 = vmax.xlane.f32.xlu1 %v1034_v2  ;;  %v869_v2 = vsel %vm645_vm6, -10.0, %v2807_v33  ;;  %v902_v33 = vsel %vm678_vm7, -10.0, %v2820_v51  ;;  %v711_v51 = vsel %vm647_vm8, %v2826_v58, 0.0 }
 0x197   : > { %v1037_v23 = vmax.f32 %v2969_v47, %v2967_v59  ;;  %v2987_v62 = vmul.f32 14.285714, %v869_v2  ;;  %v567_v2 = vadd.s32 104, %v2612_v19 }
 0x199   : > { %782 = vadd.xlane.f32.xlu0 %v707_v3  ;;  %v2977_v3 = vmul.f32 14.285714, %v2788_v21  ;;  %v1040_v49 = vmax.f32 %v2987_v62, %v2985_v0  ;;  %vm649_vm10 = vcmp.eq.s32.totalorder %v567_v2, %v2614_v20  ;;  %v568_v2 = vadd.s32 112, %v2612_v19 }
 0x19a   : > { %1083 = vmax.xlane.f32.xlu1 %v1082_v52  ;;  %v2979_v52 = vmul.f32 14.285714, %v900_v16  ;;  %v2997_v16 = vmul.f32 14.285714, %v902_v33  ;;  %v3011_v33 = vmul.f32 14.285714, %v2837_v6 }
 0x19b   : > { %vm651_vm12 = vcmp.eq.s32.totalorder %v568_v2, %v2614_v20 }
 0x19c   : > { %v1085_v21 = vmax.f32 %v2977_v3, %v2979_v52  ;;  %v875_v2 = vsel %vm651_vm12, -10.0, %v2878_v24 }
 0x19d   : > { %830 = vadd.xlane.f32.xlu0 %v740_v1  ;;  %v582_v1 = vadd.s32 224, %v2612_v19 }
 0x19e   : > { %785 = vadd.xlane.f32.xlu1 %v709_v34  ;;  %v2995_v34 = vmul.f32 14.285714, %v2809_v41  ;;  %v583_v41 = vadd.s32 232, %v2612_v19 }
 0x19f   : > { %vm680_vm9 = vcmp.eq.s32.totalorder %v582_v1, %v2620_v22  ;;  %v713_v1 = vsel %vm649_vm10, %v2852_v48, 0.0 }
 0x1a0   : > { %v904_v58 = vsel %vm680_vm9, -10.0, %v2839_v30  ;;  %vm682_vm11 = vcmp.eq.s32.totalorder %v583_v41, %v2620_v22 }
 0x1a1   : > { %1038 = vmax.xlane.f32.xlu0 %v1037_v23  ;;  %v1088_v23 = vmax.f32 %v2995_v34, %v2997_v16 }
 0x1a2   : > { %833 = vadd.xlane.f32.xlu1 %v742_v8  ;;  %v744_v8 = vsel %vm680_vm9, %v2839_v30, 0.0  ;;  %v3029_v30 = vmul.f32 14.285714, %v2860_v56 }
 0x1a5   : > { %1086 = vmax.xlane.f32.xlu0 %v1085_v21  ;;  %v3013_v21 = vmul.f32 14.285714, %v871_v63  ;;  %v746_v63 = vsel %vm682_vm11, %v2862_v4, 0.0 }
 0x1a6   : > { %1041 = vmax.xlane.f32.xlu1 %v1040_v49  ;;  %v873_v49 = vsel %vm649_vm10, -10.0, %v2852_v48  ;;  %v906_v48 = vsel %vm682_vm11, -10.0, %v2862_v4  ;;  %v715_v4 = vsel %vm651_vm12, %v2878_v24, 0.0 }
 0x1a7   : > { %v1043_v6 = vmax.f32 %v3013_v21, %v3011_v33  ;;  %v3031_v41 = vmul.f32 14.285714, %v873_v49  ;;  %v569_v49 = vadd.s32 120, %v2612_v19 }
 0x1a9   : > { %788 = vadd.xlane.f32.xlu0 %v711_v51  ;;  %v3021_v51 = vmul.f32 14.285714, %v2828_v12  ;;  %v1046_v56 = vmax.f32 %v3031_v41, %v3029_v30  ;;  %vm653_vm14 = vcmp.eq.s32.totalorder %v569_v49, %v2614_v20  ;;  %v3064_v20 = vmul.f32 14.285714, %v2880_v5 }
 0x1aa   : > { %1089 = vmax.xlane.f32.xlu1 %v1088_v23  ;;  %v3023_v23 = vmul.f32 14.285714, %v904_v58  ;;  %v3041_v58 = vmul.f32 14.285714, %v906_v48  ;;  %v3055_v48 = vmul.f32 14.285714, %v2887_v32 }
 0x1ac   : > { %v1091_v12 = vmax.f32 %v3021_v51, %v3023_v23 }
 0x1ad   : > { %836 = vadd.xlane.f32.xlu0 %v744_v8  ;;  %v584_v8 = vadd.s32 240, %v2612_v19 }
 0x1ae   : > { %791 = vadd.xlane.f32.xlu1 %v713_v1  ;;  %v3039_v1 = vmul.f32 14.285714, %v2854_v44  ;;  %v585_v44 = vadd.s32 248, %v2612_v19  ;;  %v877_v19 = vsel %vm653_vm14, -10.0, %v2899_v13 }
 0x1af   : > { %vm684_vm13 = vcmp.eq.s32.totalorder %v584_v8, %v2620_v22  ;;  %v717_v8 = vsel %vm653_vm14, %v2899_v13, 0.0  ;;  %v3080_v13 = vmul.f32 14.285714, %v2901_v54 }
 0x1b0   : > { %v908_v24 = vsel %vm684_vm13, -10.0, %v2889_v15  ;;  %vm686_vm15 = vcmp.eq.s32.totalorder %v585_v44, %v2620_v22 }
 0x1b1   : > { %1044 = vmax.xlane.f32.xlu0 %v1043_v6  ;;  %v1094_v6 = vmax.f32 %v3039_v1, %v3041_v58  ;;  %v750_v49 = vsel %vm686_vm15, %v2912_v14, 0.0  ;;  %v910_v22 = vsel %vm686_vm15, -10.0, %v2912_v14  ;;  %3692 = vst [vmem:[#allocation22_spill] sm:$0xff] %v3080_v13 }
 0x1b2   : > { %839 = vadd.xlane.f32.xlu1 %v746_v63  ;;  %v748_v63 = vsel %vm684_vm13, %v2889_v15, 0.0  ;;  %v3074_v15 = vmul.f32 14.285714, %v877_v19 }
 0x1b5   : > { %1092 = vmax.xlane.f32.xlu0 %v1091_v12  ;;  %v3057_v12 = vmul.f32 14.285714, %v875_v2  ;;  %v3082_v2 = vmul.f32 14.285714, %v910_v22 }
 0x1b6   : > { %1047 = vmax.xlane.f32.xlu1 %v1046_v56  ;;  %v3066_v56 = vmul.f32 14.285714, %v908_v24 }
 0x1b7   : > { %v1049_v32 = vmax.f32 %v3057_v12, %v3055_v48  ;;  %3693 = vst [vmem:[#allocation23_spill] sm:$0xff] %v3082_v2 }
 0x1b8   : > { %v1097_v5 = vmax.f32 %v3064_v20, %v3066_v56 }
 0x1b9   : > { %794 = vadd.xlane.f32.xlu0 %v715_v4  ;;  %v3072_v4 = vmul.f32 14.285714, %v2910_v10  ;;  %v1100_v10 = vmax.f32 %v3080_v13, %v3082_v2 }
 0x1ba   : > { %1095 = vmax.xlane.f32.xlu1 %v1094_v6 }
 0x1bb   : > { %3691 = vst [vmem:[#allocation21_spill] sm:$0xff] %v3072_v4  ;;  %v1052_v6 = vmax.f32 %v3074_v15, %v3072_v4 }
 0x1bd   : > { %842 = vadd.xlane.f32.xlu0 %v748_v63 }
 0x1be   : > { %797 = vadd.xlane.f32.xlu1 %v717_v8 }
 0x1c1   : > { %1050 = vmax.xlane.f32.xlu0 %v1049_v32 }
 0x1c2   : > { %845 = vadd.xlane.f32.xlu1 %v750_v49 }
 0x1c5   : > { %1098 = vmax.xlane.f32.xlu0 %v1097_v5 }
 0x1c6   : > { %1053 = vmax.xlane.f32.xlu1 %v1052_v6 }
 0x1ca   : > { %1101 = vmax.xlane.f32.xlu1 %v1100_v10 }
 0x1d6   : > { %v753_v14 = vpop.xlane.xlu0 %752 }
 0x1d7   : > { %v3088_v19 = vmul.f32 14.285714, %v753_v14 }
 0x1d9   : > { %3694 = vst [vmem:[#allocation24_spill] sm:$0xff] %v3088_v19 }
 0x1da   : > { %v801_v44 = vpop.xlane.xlu0 %800 }
 0x1db   : > { %v804_v63 = vpop.xlane.xlu1 %803  ;;  %v3098_v6 = vmul.f32 14.285714, %v801_v44 }
 0x1dc   : > { %v3104_v14 = vmul.f32 14.285714, %v804_v63 }
 0x1dd   : > { %3696 = vst [vmem:[#allocation26_spill] sm:$0xff] %v3098_v6 }
 0x1de   : > { %v756_v8 = vpop.xlane.xlu0 %755  ;;  %3697 = vst [vmem:[#allocation27_spill] sm:$0xff] %v3104_v14 }
 0x1df   : > { %v759_v24 = vpop.xlane.xlu1 %758  ;;  %v3090_v54 = vmul.f32 14.285714, %v756_v8 }
 0x1e1   : > { %3695 = vst [vmem:[#allocation25_spill] sm:$0xff] %v3090_v54 }
 0x1e2   : > { %v1009_v32 = vpop.xlane.xlu0 %1008 }
 0x1e3   : > { %v3093_v49 = vmax.f32 %v3088_v19, %v1009_v32  ;;  %v1012_v22 = vpop.xlane.xlu1 %1011 }
 0x1e4   : > { %v3096_v5 = vmax.f32 %v3090_v54, %v1012_v22 }
 0x1e5   : > { %v1231_v10 = vsub.f32 %v2637_v39, %v3093_v49  ;;  %v1232_v2 = vsub.f32 %v2635_v38, %v3093_v49 }
 0x1e6   : > { %v1233_v8 = vsub.f32 %v2645_v46, %v3096_v5  ;;  %v1234_v32 = vsub.f32 %v2639_v40, %v3096_v5  ;;  %v1057_v19 = vpop.xlane.xlu0 %1056 }
 0x1e7   : > { %v1295_v13 = vmul.f32 1.442695, %v1231_v10  ;;  %v1297_v22 = vmul.f32 1.442695, %v1232_v2  ;;  %v3111_v44 = vmax.f32 %v3098_v6, %v1057_v19  ;;  %v1060_v54 = vpop.xlane.xlu1 %1059 }
 0x1e8   : > { %v3114_v39 = vmax.f32 %v3104_v14, %v1060_v54  ;;  %v1299_v4 = vmul.f32 1.442695, %v1233_v8  ;;  %v1301_v63 = vmul.f32 1.442695, %v1234_v32  ;;  %v3124_v14 = vmul.f32 14.285714, %v759_v24 }
 0x1e9   : > { %v1263_v38 = vsub.f32 %v2661_v60, %v3111_v44  ;;  %v1264_v46 = vsub.f32 %v2651_v50, %v3111_v44  ;;  %1963 = vpow2.f32 %v1295_v13 }
 0x1ea   : > { %v807_v40 = vpop.xlane.xlu0 %806  ;;  %1965 = vpow2.f32 %v1297_v22  ;;  %v1265_v2 = vsub.f32 %v2663_v61, %v3114_v39  ;;  %v1266_v54 = vsub.f32 %v2656_v55, %v3114_v39 }
 0x1eb   : > { %v762_v19 = vpop.xlane.xlu1 %761  ;;  %v1359_v10 = vmul.f32 1.442695, %v1263_v38  ;;  %1967 = vpow2.f32 %v1299_v4  ;;  %v1361_v8 = vmul.f32 1.442695, %v1264_v46  ;;  %v3133_v24 = vmul.f32 14.285714, %v807_v40 }
 0x1ec   : > { %1969 = vpow2.f32 %v1301_v63  ;;  %v1363_v6 = vmul.f32 1.442695, %v1265_v2  ;;  %v1365_v32 = vmul.f32 1.442695, %v1266_v54  ;;  %v3135_v4 = vmul.f32 14.285714, %v762_v19 }
 0x1ed   : > { %1971 = vpow2.f32 %v1359_v10  ;;  %3698 = vst [vmem:[#allocation28_spill] sm:$0xff] %v3133_v24 }
 0x1ee   : > { %v1015_v60 = vpop.xlane.xlu0 %1014  ;;  %1973 = vpow2.f32 %v1361_v8  ;;  %3699 = vst [vmem:[#allocation29_spill] sm:$0xff] %v3135_v4 }
 0x1ef   : > { %v3127_v50 = vmax.f32 %v3124_v14, %v1015_v60  ;;  %v810_v13 = vpop.xlane.xlu1 %809  ;;  %1975 = vpow2.f32 %v1363_v6 }
 0x1f0   : > { %1977 = vpow2.f32 %v1365_v32  ;;  %v3147_v8 = vmul.f32 14.285714, %v810_v13 }
 0x1f1   : > { %v1235_v61 = vsub.f32 %v2680_v9, %v3127_v50  ;;  %v1236_v55 = vsub.f32 %v2676_v7, %v3127_v50 }
 0x1f2   : > { %v1063_v22 = vpop.xlane.xlu0 %1062 }
 0x1f3   : > { %v1303_v38 = vmul.f32 1.442695, %v1235_v61  ;;  %v1305_v46 = vmul.f32 1.442695, %v1236_v55  ;;  %v1018_v63 = vpop.xlane.xlu1 %1017  ;;  %v1964_v2 = vpop.eup %1963  ;;  %v3138_v10 = vmax.f32 %v3133_v24, %v1063_v22 }
 0x1f4   : > { %v3141_v54 = vmax.f32 %v3135_v4, %v1018_v63  ;;  %v1966_v9 = vpop.eup %1965 }
 0x1f5   : > { %3700 = vst [vmem:[#allocation30_spill] sm:$0xff] %v3138_v10  ;;  %1979 = vpow2.f32 %v1303_v38  ;;  %v1267_v7 = vsub.f32 %v2695_v17, %v3138_v10  ;;  %v1268_v40 = vsub.f32 %v2697_v18, %v3138_v10  ;;  %v1968_v19 = vpop.eup %1967  ;;  %v1423_v63 = vadd.f32 %v1966_v9, %v1964_v2 }
 0x1f6   : > { %v765_v6 = vpop.xlane.xlu0 %764  ;;  %1981 = vpow2.f32 %v1305_v46  ;;  %v1237_v60 = vsub.f32 %v2710_v27, %v3141_v54  ;;  %v1238_v32 = vsub.f32 %v2708_v26, %v3141_v54  ;;  %v1970_v55 = vpop.eup %1969 }
 0x1f7   : > { %v1066_v61 = vpop.xlane.xlu1 %1065  ;;  %v1367_v22 = vmul.f32 1.442695, %v1267_v7  ;;  %v1369_v38 = vmul.f32 1.442695, %v1268_v40  ;;  %v1972_v18 = vpop.eup %1971  ;;  %1424 = vadd.xlane.f32.xlu0 %v1423_v63  ;;  %v1426_v46 = vadd.f32 %v1970_v55, %v1968_v19  ;;  %v3160_v40 = vmul.f32 14.285714, %v765_v6 }
 0x1f8   : > { %v3154_v17 = vmax.f32 %v3147_v8, %v1066_v61  ;;  %v1307_v4 = vmul.f32 1.442695, %v1237_v60  ;;  %v1974_v24 = vpop.eup %1973  ;;  %v1309_v10 = vmul.f32 1.442695, %v1238_v32 }
 0x1f9   : > { %1983 = vpow2.f32 %v1367_v22  ;;  %1427 = vadd.xlane.f32.xlu1 %v1426_v46  ;;  %v1471_v2 = vadd.f32 %v1974_v24, %v1972_v18  ;;  %v1976_v9 = vpop.eup %1975  ;;  %3701 = vst [vmem:[#allocation31_spill] sm:$0xff] %v3160_v40  ;;  %v3704_v24 = vld [vmem:[#allocation9_spill] sm:$0xff] }
 0x1fa   : > { %v813_v13 = vpop.xlane.xlu0 %812  ;;  %v1269_v27 = vsub.f32 %v2727_v36, %v3154_v17  ;;  %v1270_v26 = vsub.f32 %v2729_v37, %v3154_v17  ;;  %1985 = vpow2.f32 %v1369_v38  ;;  %v1978_v61 = vpop.eup %1977 }
 0x1fb   : > { %v768_v7 = vpop.xlane.xlu1 %767  ;;  %1987 = vpow2.f32 %v1307_v4  ;;  %1472 = vadd.xlane.f32.xlu0 %v1471_v2  ;;  %v1474_v32 = vadd.f32 %v1978_v61, %v1976_v9  ;;  %v3165_v38 = vmul.f32 14.285714, %v813_v13  ;;  %v3705_v4 = vld [vmem:[#allocation8_spill] sm:$0xff] }
 0x1fc   : > { %v1371_v60 = vmul.f32 1.442695, %v1269_v27  ;;  %v1373_v19 = vmul.f32 1.442695, %v1270_v26  ;;  %1989 = vpow2.f32 %v1309_v10  ;;  %v3171_v46 = vmul.f32 14.285714, %v768_v7 }
 0x1fd   : > { %3703 = vst [vmem:[#allocation33_spill] sm:$0xff] %v3165_v38  ;;  %1475 = vadd.xlane.f32.xlu1 %v1474_v32 }
 0x1fe   : > { %v1021_v55 = vpop.xlane.xlu0 %1020  ;;  %1991 = vpow2.f32 %v1371_v60  ;;  %3706 = vst [vmem:[#allocation9_spill] sm:$0xff] %v3171_v46 }
 0x1ff   : > { %v3163_v36 = vmax.f32 %v3160_v40, %v1021_v55  ;;  %v816_v22 = vpop.xlane.xlu1 %815  ;;  %v1980_v37 = vpop.eup %1979  ;;  %1993 = vpow2.f32 %v1373_v19  ;;  %v3709_v55 = vld [vmem:[#allocation10_spill] sm:$0xff]  ;;  %v3710_v19 = vld [vmem:[#allocation11_spill] sm:$0xff] }
 0x200   : > { %v1982_v63 = vpop.eup %1981 }
 0x201   : > { %3702 = vst [vmem:[#allocation32_spill] sm:$0xff] %v3163_v36  ;;  %v1239_v6 = vsub.f32 %v3704_v24, %v3163_v36  ;;  %v1240_v18 = vsub.f32 %v3705_v4, %v3163_v36  ;;  %v1429_v27 = vadd.f32 %v1982_v63, %v1980_v37  ;;  %v3711_v37 = vld [vmem:[#allocation13_spill] sm:$0xff] }
 0x202   : > { %v1069_v10 = vpop.xlane.xlu0 %1068 }
 0x203   : > { %v1311_v26 = vmul.f32 1.442695, %v1239_v6  ;;  %v1313_v2 = vmul.f32 1.442695, %v1240_v18  ;;  %v3174_v9 = vmax.f32 %v3165_v38, %v1069_v10  ;;  %v1024_v60 = vpop.xlane.xlu1 %1023  ;;  %1430 = vadd.xlane.f32.xlu0 %v1429_v27  ;;  %v1984_v61 = vpop.eup %1983  ;;  %v3712_v6 = vld [vmem:[#allocation12_spill] sm:$0xff] }
 0x204   : > { %v3177_v13 = vmax.f32 %v3171_v46, %v1024_v60  ;;  %v1986_v24 = vpop.eup %1985  ;;  %v3187_v10 = vmul.f32 14.285714, %v816_v22  ;;  %v3713_v22 = vld [vmem:[#allocation14_spill] sm:$0xff] }
 0x205   : > { %3707 = vst [vmem:[#allocation8_spill] sm:$0xff] %v3174_v9  ;;  %v1271_v32 = vsub.f32 %v3709_v55, %v3174_v9  ;;  %v1272_v7 = vsub.f32 %v3710_v19, %v3174_v9  ;;  %1995 = vpow2.f32 %v1311_v26  ;;  %v1988_v38 = vpop.eup %1987  ;;  %v1477_v55 = vadd.f32 %v1986_v24, %v1984_v61 }
 0x206   : > { %3708 = vst [vmem:[#allocation34_spill] sm:$0xff] %v3177_v13  ;;  %v1241_v63 = vsub.f32 %v3711_v37, %v3177_v13  ;;  %v1242_v4 = vsub.f32 %v3712_v6, %v3177_v13  ;;  %v771_v18 = vpop.xlane.xlu0 %770  ;;  %1997 = vpow2.f32 %v1313_v2  ;;  %v1990_v40 = vpop.eup %1989 }
 0x207   : > { %v1375_v27 = vmul.f32 1.442695, %v1271_v32  ;;  %v1377_v60 = vmul.f32 1.442695, %v1272_v7  ;;  %v1072_v46 = vpop.xlane.xlu1 %1071  ;;  %1478 = vadd.xlane.f32.xlu0 %v1477_v55  ;;  %v1432_v37 = vadd.f32 %v1990_v40, %v1988_v38  ;;  %v3714_v32 = vld [vmem:[#allocation15_spill] sm:$0xff] }
 0x208   : > { %v1315_v36 = vmul.f32 1.442695, %v1241_v63  ;;  %v3190_v19 = vmax.f32 %v3187_v10, %v1072_v46  ;;  %v1317_v26 = vmul.f32 1.442695, %v1242_v4  ;;  %v1992_v6 = vpop.eup %1991  ;;  %v3196_v24 = vmul.f32 14.285714, %v771_v18 }
 0x209   : > { %1999 = vpow2.f32 %v1375_v27  ;;  %v1994_v61 = vpop.eup %1993  ;;  %1433 = vadd.xlane.f32.xlu1 %v1432_v37  ;;  %v3719_v37 = vld [vmem:[#allocation16_spill] sm:$0xff] }
 0x20a   : > { %v819_v9 = vpop.xlane.xlu0 %818  ;;  %2001 = vpow2.f32 %v1377_v60  ;;  %v1273_v2 = vsub.f32 %v3713_v22, %v3190_v19  ;;  %v1274_v7 = vsub.f32 %v3714_v32, %v3190_v19  ;;  %3715 = vst [vmem:[#allocation10_spill] sm:$0xff] %v3196_v24  ;;  %v1480_v4 = vadd.f32 %v1994_v61, %v1992_v6 }
 0x20b   : > { %v774_v13 = vpop.xlane.xlu1 %773  ;;  %2003 = vpow2.f32 %v1315_v36  ;;  %v3201_v22 = vmul.f32 14.285714, %v819_v9  ;;  %v3718_v36 = vld [vmem:[#allocation17_spill] sm:$0xff] }
 0x20c   : > { %v1379_v46 = vmul.f32 1.442695, %v1273_v2  ;;  %v1381_v63 = vmul.f32 1.442695, %v1274_v7  ;;  %2005 = vpow2.f32 %v1317_v26  ;;  %v3207_v26 = vmul.f32 14.285714, %v774_v13 }
 0x20d   : > { %1481 = vadd.xlane.f32.xlu1 %v1480_v4  ;;  %3717 = vst [vmem:[#allocation13_spill] sm:$0xff] %v3201_v22  ;;  %v3723_v13 = vld [vmem:[#allocation18_spill] sm:$0xff] }
 0x20e   : > { %v1027_v40 = vpop.xlane.xlu0 %1026  ;;  %2007 = vpow2.f32 %v1379_v46  ;;  %3720 = vst [vmem:[#allocation12_spill] sm:$0xff] %v3207_v26 }
 0x20f   : > { %v3199_v38 = vmax.f32 %v3196_v24, %v1027_v40  ;;  %v822_v27 = vpop.xlane.xlu1 %821  ;;  %v1996_v60 = vpop.eup %1995  ;;  %2009 = vpow2.f32 %v1381_v63 }
 0x210   : > { %v1998_v55 = vpop.eup %1997 }
 0x211   : > { %3716 = vst [vmem:[#allocation11_spill] sm:$0xff] %v3199_v38  ;;  %v1243_v18 = vsub.f32 %v3718_v36, %v3199_v38  ;;  %v1244_v2 = vsub.f32 %v3719_v37, %v3199_v38  ;;  %v1435_v32 = vadd.f32 %v1998_v55, %v1996_v60  ;;  %v3724_v55 = vld [vmem:[#allocation19_spill] sm:$0xff] }
 0x212   : > { %v1075_v6 = vpop.xlane.xlu0 %1074 }
 0x213   : > { %v1319_v7 = vmul.f32 1.442695, %v1243_v18  ;;  %v1321_v61 = vmul.f32 1.442695, %v1244_v2  ;;  %v3210_v40 = vmax.f32 %v3201_v22, %v1075_v6  ;;  %v1030_v46 = vpop.xlane.xlu1 %1029  ;;  %v2000_v4 = vpop.eup %1999  ;;  %1436 = vadd.xlane.f32.xlu0 %v1435_v32  ;;  %v3223_v32 = vmul.f32 14.285714, %v822_v27 }
 0x214   : > { %v3213_v9 = vmax.f32 %v3207_v26, %v1030_v46  ;;  %v2002_v63 = vpop.eup %2001 }
 0x215   : > { %3721 = vst [vmem:[#allocation14_spill] sm:$0xff] %v3210_v40  ;;  %v1275_v36 = vsub.f32 %v2868_v11, %v3210_v40  ;;  %v1276_v37 = vsub.f32 %v3723_v13, %v3210_v40  ;;  %2011 = vpow2.f32 %v1319_v7  ;;  %v2004_v6 = vpop.eup %2003  ;;  %v1483_v11 = vadd.f32 %v2002_v63, %v2000_v4 }
 0x216   : > { %3722 = vst [vmem:[#allocation15_spill] sm:$0xff] %v3213_v9  ;;  %v1245_v60 = vsub.f32 %v2885_v25, %v3213_v9  ;;  %v1246_v18 = vsub.f32 %v3724_v55, %v3213_v9  ;;  %v777_v2 = vpop.xlane.xlu0 %776  ;;  %2013 = vpow2.f32 %v1321_v61  ;;  %v2006_v24 = vpop.eup %2005  ;;  %v3725_v61 = vld [vmem:[#allocation20_spill] sm:$0xff] }
 0x217   : > { %v1383_v46 = vmul.f32 1.442695, %v1275_v36  ;;  %v1385_v26 = vmul.f32 1.442695, %v1276_v37  ;;  %v1078_v22 = vpop.xlane.xlu1 %1077  ;;  %v1438_v7 = vadd.f32 %v2006_v24, %v2004_v6  ;;  %1484 = vadd.xlane.f32.xlu0 %v1483_v11 }
 0x218   : > { %v1323_v38 = vmul.f32 1.442695, %v1245_v60  ;;  %v3226_v13 = vmax.f32 %v3223_v32, %v1078_v22  ;;  %v2008_v40 = vpop.eup %2007  ;;  %v1325_v25 = vmul.f32 1.442695, %v1246_v18  ;;  %v3232_v22 = vmul.f32 14.285714, %v777_v2 }
 0x219   : > { %2015 = vpow2.f32 %v1383_v46  ;;  %v2010_v9 = vpop.eup %2009  ;;  %1439 = vadd.xlane.f32.xlu1 %v1438_v7 }
 0x21a   : > { %v825_v55 = vpop.xlane.xlu0 %824  ;;  %2017 = vpow2.f32 %v1385_v26  ;;  %v1277_v27 = vsub.f32 %v2904_v29, %v3226_v13  ;;  %v1278_v36 = vsub.f32 %v3725_v61, %v3226_v13  ;;  %v1486_v63 = vadd.f32 %v2010_v9, %v2008_v40 }
 0x21b   : > { %v780_v4 = vpop.xlane.xlu1 %779  ;;  %2019 = vpow2.f32 %v1323_v38  ;;  %v3237_v46 = vmul.f32 14.285714, %v825_v55 }
 0x21c   : > { %v1387_v24 = vmul.f32 1.442695, %v1277_v27  ;;  %v1389_v37 = vmul.f32 1.442695, %v1278_v36  ;;  %2021 = vpow2.f32 %v1325_v25  ;;  %v3243_v9 = vmul.f32 14.285714, %v780_v4 }
 0x21d   : > { %1487 = vadd.xlane.f32.xlu1 %v1486_v63 }
 0x21e   : > { %v1033_v60 = vpop.xlane.xlu0 %1032  ;;  %2023 = vpow2.f32 %v1387_v24  ;;  %3726 = vst [vmem:[#allocation17_spill] sm:$0xff] %v3243_v9 }
 0x21f   : > { %v3235_v18 = vmax.f32 %v3232_v22, %v1033_v60  ;;  %v828_v26 = vpop.xlane.xlu1 %827  ;;  %v2012_v6 = vpop.eup %2011  ;;  %2025 = vpow2.f32 %v1389_v37 }
 0x220   : > { %v2014_v29 = vpop.eup %2013 }
 0x221   : > { %v1247_v38 = vsub.f32 %v2925_v43, %v3235_v18  ;;  %v1248_v40 = vsub.f32 %v2923_v31, %v3235_v18  ;;  %v1441_v11 = vadd.f32 %v2014_v29, %v2012_v6  ;;  %v3259_v6 = vmul.f32 14.285714, %v828_v26 }
 0x222   : > { %v1081_v2 = vpop.xlane.xlu0 %1080 }
 0x223   : > { %v1327_v7 = vmul.f32 1.442695, %v1247_v38  ;;  %v1329_v25 = vmul.f32 1.442695, %v1248_v40  ;;  %v3246_v27 = vmax.f32 %v3237_v46, %v1081_v2  ;;  %v1036_v61 = vpop.xlane.xlu1 %1035  ;;  %v2016_v36 = vpop.eup %2015  ;;  %1442 = vadd.xlane.f32.xlu0 %v1441_v11 }
 0x224   : > { %v3249_v55 = vmax.f32 %v3243_v9, %v1036_v61  ;;  %v2018_v63 = vpop.eup %2017 }
 0x225   : > { %v1279_v43 = vsub.f32 %v2933_v35, %v3246_v27  ;;  %v1280_v31 = vsub.f32 %v2935_v57, %v3246_v27  ;;  %2027 = vpow2.f32 %v1327_v7  ;;  %v2020_v60 = vpop.eup %2019  ;;  %v1489_v35 = vadd.f32 %v2018_v63, %v2016_v36 }
 0x226   : > { %v1249_v4 = vsub.f32 %v2943_v28, %v3249_v55  ;;  %v1250_v24 = vsub.f32 %v2941_v53, %v3249_v55  ;;  %v783_v37 = vpop.xlane.xlu0 %782  ;;  %2029 = vpow2.f32 %v1329_v25  ;;  %v2022_v2 = vpop.eup %2021 }
 0x227   : > { %v1391_v29 = vmul.f32 1.442695, %v1279_v43  ;;  %v1393_v38 = vmul.f32 1.442695, %v1280_v31  ;;  %v1084_v40 = vpop.xlane.xlu1 %1083  ;;  %v1444_v7 = vadd.f32 %v2022_v2, %v2020_v60  ;;  %1490 = vadd.xlane.f32.xlu0 %v1489_v35  ;;  %v3268_v43 = vmul.f32 14.285714, %v783_v37 }
 0x228   : > { %v1331_v11 = vmul.f32 1.442695, %v1249_v4  ;;  %v3262_v57 = vmax.f32 %v3259_v6, %v1084_v40  ;;  %v2024_v61 = vpop.eup %2023  ;;  %v1333_v28 = vmul.f32 1.442695, %v1250_v24 }
 0x229   : > { %2031 = vpow2.f32 %v1391_v29  ;;  %v2026_v9 = vpop.eup %2025  ;;  %1445 = vadd.xlane.f32.xlu1 %v1444_v7 }
 0x22a   : > { %v831_v53 = vpop.xlane.xlu0 %830  ;;  %2033 = vpow2.f32 %v1393_v38  ;;  %v1281_v26 = vsub.f32 %v2951_v42, %v3262_v57  ;;  %v1282_v25 = vsub.f32 %v2953_v45, %v3262_v57  ;;  %v1492_v63 = vadd.f32 %v2026_v9, %v2024_v61 }
 0x22b   : > { %v786_v36 = vpop.xlane.xlu1 %785  ;;  %2035 = vpow2.f32 %v1331_v11  ;;  %v3273_v45 = vmul.f32 14.285714, %v831_v53 }
 0x22c   : > { %v1395_v31 = vmul.f32 1.442695, %v1281_v26  ;;  %v1397_v4 = vmul.f32 1.442695, %v1282_v25  ;;  %2037 = vpow2.f32 %v1333_v28  ;;  %v3279_v40 = vmul.f32 14.285714, %v786_v36 }
 0x22d   : > { %1493 = vadd.xlane.f32.xlu1 %v1492_v63 }
 0x22e   : > { %v1039_v24 = vpop.xlane.xlu0 %1038  ;;  %2039 = vpow2.f32 %v1395_v31 }
 0x22f   : > { %v3271_v60 = vmax.f32 %v3268_v43, %v1039_v24  ;;  %v834_v29 = vpop.xlane.xlu1 %833  ;;  %v2028_v38 = vpop.eup %2027  ;;  %2041 = vpow2.f32 %v1397_v4 }
 0x230   : > { %v2030_v42 = vpop.eup %2029  ;;  %v3295_v24 = vmul.f32 14.285714, %v834_v29 }
 0x231   : > { %v1251_v9 = vsub.f32 %v2969_v47, %v3271_v60  ;;  %v1252_v37 = vsub.f32 %v2967_v59, %v3271_v60  ;;  %v1447_v35 = vadd.f32 %v2030_v42, %v2028_v38 }
 0x232   : > { %v1087_v2 = vpop.xlane.xlu0 %1086 }
 0x233   : > { %v1335_v11 = vmul.f32 1.442695, %v1251_v9  ;;  %v1337_v7 = vmul.f32 1.442695, %v1252_v37  ;;  %v3282_v61 = vmax.f32 %v3273_v45, %v1087_v2  ;;  %v1042_v28 = vpop.xlane.xlu1 %1041  ;;  %v2032_v26 = vpop.eup %2031  ;;  %1448 = vadd.xlane.f32.xlu0 %v1447_v35 }
 0x234   : > { %v3285_v53 = vmax.f32 %v3279_v40, %v1042_v28  ;;  %v2034_v25 = vpop.eup %2033 }
 0x235   : > { %v1283_v47 = vsub.f32 %v2977_v3, %v3282_v61  ;;  %v1284_v59 = vsub.f32 %v2979_v52, %v3282_v61  ;;  %2043 = vpow2.f32 %v1335_v11  ;;  %v2036_v4 = vpop.eup %2035  ;;  %v1495_v3 = vadd.f32 %v2034_v25, %v2032_v26 }
 0x236   : > { %v1253_v36 = vsub.f32 %v2987_v62, %v3285_v53  ;;  %v1254_v63 = vsub.f32 %v2985_v0, %v3285_v53  ;;  %v789_v31 = vpop.xlane.xlu0 %788  ;;  %2045 = vpow2.f32 %v1337_v7  ;;  %v2038_v37 = vpop.eup %2037 }
 0x237   : > { %v1399_v38 = vmul.f32 1.442695, %v1283_v47  ;;  %v1401_v42 = vmul.f32 1.442695, %v1284_v59  ;;  %v1090_v9 = vpop.xlane.xlu1 %1089  ;;  %v1450_v35 = vadd.f32 %v2038_v37, %v2036_v4  ;;  %1496 = vadd.xlane.f32.xlu0 %v1495_v3  ;;  %v3304_v47 = vmul.f32 14.285714, %v789_v31 }
 0x238   : > { %v1339_v2 = vmul.f32 1.442695, %v1253_v36  ;;  %v3298_v52 = vmax.f32 %v3295_v24, %v1090_v9  ;;  %v2040_v11 = vpop.eup %2039  ;;  %v1341_v62 = vmul.f32 1.442695, %v1254_v63 }
 0x239   : > { %2047 = vpow2.f32 %v1399_v38  ;;  %v2042_v28 = vpop.eup %2041  ;;  %1451 = vadd.xlane.f32.xlu1 %v1450_v35 }
 0x23a   : > { %v837_v0 = vpop.xlane.xlu0 %836  ;;  %2049 = vpow2.f32 %v1401_v42  ;;  %v1285_v29 = vsub.f32 %v2995_v34, %v3298_v52  ;;  %v1286_v7 = vsub.f32 %v2997_v16, %v3298_v52  ;;  %v1498_v25 = vadd.f32 %v2042_v28, %v2040_v11 }
 0x23b   : > { %v792_v26 = vpop.xlane.xlu1 %791  ;;  %2051 = vpow2.f32 %v1339_v2  ;;  %v3309_v16 = vmul.f32 14.285714, %v837_v0 }
 0x23c   : > { %v1403_v59 = vmul.f32 1.442695, %v1285_v29  ;;  %v1405_v36 = vmul.f32 1.442695, %v1286_v7  ;;  %2053 = vpow2.f32 %v1341_v62  ;;  %v3315_v37 = vmul.f32 14.285714, %v792_v26 }
 0x23d   : > { %1499 = vadd.xlane.f32.xlu1 %v1498_v25 }
 0x23e   : > { %v1045_v63 = vpop.xlane.xlu0 %1044  ;;  %2055 = vpow2.f32 %v1403_v59 }
 0x23f   : > { %v3307_v4 = vmax.f32 %v3304_v47, %v1045_v63  ;;  %v840_v38 = vpop.xlane.xlu1 %839  ;;  %v2044_v42 = vpop.eup %2043  ;;  %2057 = vpow2.f32 %v1405_v36 }
 0x240   : > { %v2046_v34 = vpop.eup %2045  ;;  %v3331_v63 = vmul.f32 14.285714, %v840_v38 }
 0x241   : > { %v1255_v9 = vsub.f32 %v3013_v21, %v3307_v4  ;;  %v1256_v31 = vsub.f32 %v3011_v33, %v3307_v4  ;;  %v1453_v2 = vadd.f32 %v2046_v34, %v2044_v42 }
 0x242   : > { %v1093_v3 = vpop.xlane.xlu0 %1092  ;;  %3727 = vst [vmem:[#allocation16_spill] sm:$0xff] %v3331_v63 }
 0x243   : > { %v1343_v35 = vmul.f32 1.442695, %v1255_v9  ;;  %v1345_v11 = vmul.f32 1.442695, %v1256_v31  ;;  %v3318_v62 = vmax.f32 %v3309_v16, %v1093_v3  ;;  %v1048_v28 = vpop.xlane.xlu1 %1047  ;;  %v2048_v29 = vpop.eup %2047  ;;  %1454 = vadd.xlane.f32.xlu0 %v1453_v2 }
 0x244   : > { %v3321_v0 = vmax.f32 %v3315_v37, %v1048_v28  ;;  %v2050_v7 = vpop.eup %2049 }
 0x245   : > { %v1287_v21 = vsub.f32 %v3021_v51, %v3318_v62  ;;  %v1288_v33 = vsub.f32 %v3023_v23, %v3318_v62  ;;  %2059 = vpow2.f32 %v1343_v35  ;;  %v2052_v36 = vpop.eup %2051  ;;  %v1501_v51 = vadd.f32 %v2050_v7, %v2048_v29 }
 0x246   : > { %v1257_v26 = vsub.f32 %v3031_v41, %v3321_v0  ;;  %v1258_v25 = vsub.f32 %v3029_v30, %v3321_v0  ;;  %v795_v59 = vpop.xlane.xlu0 %794  ;;  %2061 = vpow2.f32 %v1345_v11  ;;  %v2054_v31 = vpop.eup %2053 }
 0x247   : > { %v1407_v42 = vmul.f32 1.442695, %v1287_v21  ;;  %v1409_v34 = vmul.f32 1.442695, %v1288_v33  ;;  %v1096_v9 = vpop.xlane.xlu1 %1095  ;;  %v1456_v2 = vadd.f32 %v2054_v31, %v2052_v36  ;;  %1502 = vadd.xlane.f32.xlu0 %v1501_v51  ;;  %v3340_v21 = vmul.f32 14.285714, %v795_v59 }
 0x248   : > { %v1347_v3 = vmul.f32 1.442695, %v1257_v26  ;;  %v3334_v23 = vmax.f32 %v3331_v63, %v1096_v9  ;;  %v2056_v35 = vpop.eup %2055  ;;  %v1349_v41 = vmul.f32 1.442695, %v1258_v25 }
 0x249   : > { %2063 = vpow2.f32 %v1407_v42  ;;  %v2058_v28 = vpop.eup %2057  ;;  %1457 = vadd.xlane.f32.xlu1 %v1456_v2  ;;  %3729 = vst [vmem:[#allocation19_spill] sm:$0xff] %v3340_v21 }
 0x24a   : > { %3728 = vst [vmem:[#allocation18_spill] sm:$0xff] %v3334_v23  ;;  %v843_v30 = vpop.xlane.xlu0 %842  ;;  %2065 = vpow2.f32 %v1409_v34  ;;  %v1289_v38 = vsub.f32 %v3039_v1, %v3334_v23  ;;  %v1290_v11 = vsub.f32 %v3041_v58, %v3334_v23  ;;  %v1504_v7 = vadd.f32 %v2058_v28, %v2056_v35 }
 0x24b   : > { %v798_v29 = vpop.xlane.xlu1 %797  ;;  %2067 = vpow2.f32 %v1347_v3  ;;  %v3345_v58 = vmul.f32 14.285714, %v843_v30 }
 0x24c   : > { %v1411_v33 = vmul.f32 1.442695, %v1289_v38  ;;  %v1413_v26 = vmul.f32 1.442695, %v1290_v11  ;;  %2069 = vpow2.f32 %v1349_v41  ;;  %v3351_v31 = vmul.f32 14.285714, %v798_v29 }
 0x24d   : > { %1505 = vadd.xlane.f32.xlu1 %v1504_v7  ;;  %3731 = vst [vmem:[#allocation35_spill] sm:$0xff] %v3345_v58  ;;  %v3735_v7 = vld [vmem:[#allocation21_spill] sm:$0xff] }
 0x24e   : > { %v1051_v25 = vpop.xlane.xlu0 %1050  ;;  %2071 = vpow2.f32 %v1411_v33  ;;  %3732 = vst [vmem:[#allocation36_spill] sm:$0xff] %v3351_v31 }
 0x24f   : > { %v3343_v36 = vmax.f32 %v3340_v21, %v1051_v25  ;;  %v846_v42 = vpop.xlane.xlu1 %845  ;;  %v2060_v34 = vpop.eup %2059  ;;  %2073 = vpow2.f32 %v1413_v26 }
 0x250   : > { %v2062_v1 = vpop.eup %2061  ;;  %v3367_v25 = vmul.f32 14.285714, %v846_v42  ;;  %v3738_v42 = vld [vmem:[#allocation22_spill] sm:$0xff] }
 0x251   : > { %3730 = vst [vmem:[#allocation20_spill] sm:$0xff] %v3343_v36  ;;  %v1259_v9 = vsub.f32 %v3057_v12, %v3343_v36  ;;  %v1260_v59 = vsub.f32 %v3055_v48, %v3343_v36  ;;  %v1459_v51 = vadd.f32 %v2062_v1, %v2060_v34 }
 0x252   : > { %v1099_v3 = vpop.xlane.xlu0 %1098  ;;  %3736 = vst [vmem:[#allocation21_spill] sm:$0xff] %v3367_v25 }
 0x253   : > { %v1351_v2 = vmul.f32 1.442695, %v1259_v9  ;;  %v1353_v35 = vmul.f32 1.442695, %v1260_v59  ;;  %v3354_v41 = vmax.f32 %v3345_v58, %v1099_v3  ;;  %v1054_v28 = vpop.xlane.xlu1 %1053  ;;  %v2064_v38 = vpop.eup %2063  ;;  %1460 = vadd.xlane.f32.xlu0 %v1459_v51 }
 0x254   : > { %v3357_v30 = vmax.f32 %v3351_v31, %v1054_v28  ;;  %v2066_v11 = vpop.eup %2065 }
 0x255   : > { %3733 = vst [vmem:[#allocation37_spill] sm:$0xff] %v3354_v41  ;;  %v1291_v12 = vsub.f32 %v3064_v20, %v3354_v41  ;;  %v1292_v48 = vsub.f32 %v3066_v56, %v3354_v41  ;;  %2075 = vpow2.f32 %v1351_v2  ;;  %v2068_v26 = vpop.eup %2067  ;;  %v1507_v51 = vadd.f32 %v2066_v11, %v2064_v38  ;;  %v3752_v41 = vld [vmem:[#allocation9_spill] sm:$0xff] }
 0x256   : > { %3734 = vst [vmem:[#allocation38_spill] sm:$0xff] %v3357_v30  ;;  %v1261_v29 = vsub.f32 %v3074_v15, %v3357_v30  ;;  %v1262_v33 = vsub.f32 %v3735_v7, %v3357_v30  ;;  %2077 = vpow2.f32 %v1353_v35  ;;  %v2070_v59 = vpop.eup %2069 }
 0x257   : > { %v1415_v34 = vmul.f32 1.442695, %v1291_v12  ;;  %v1417_v1 = vmul.f32 1.442695, %v1292_v48  ;;  %v1102_v9 = vpop.xlane.xlu1 %1101  ;;  %v1462_v3 = vadd.f32 %v2070_v59, %v2068_v26  ;;  %1508 = vadd.xlane.f32.xlu0 %v1507_v51  ;;  %v3739_v12 = vld [vmem:[#allocation23_spill] sm:$0xff] }
 0x258   : > { %v1355_v20 = vmul.f32 1.442695, %v1261_v29  ;;  %v3370_v56 = vmax.f32 %v3367_v25, %v1102_v9  ;;  %v2072_v2 = vpop.eup %2071  ;;  %v1357_v15 = vmul.f32 1.442695, %v1262_v33 }
 0x259   : > { %2079 = vpow2.f32 %v1415_v34  ;;  %v2074_v28 = vpop.eup %2073  ;;  %1463 = vadd.xlane.f32.xlu1 %v1462_v3 }
 0x25a   : > { %3737 = vst [vmem:[#allocation39_spill] sm:$0xff] %v3370_v56  ;;  %2081 = vpow2.f32 %v1417_v1  ;;  %v1293_v35 = vsub.f32 %v3738_v42, %v3370_v56  ;;  %v1294_v48 = vsub.f32 %v3739_v12, %v3370_v56  ;;  %v1510_v7 = vadd.f32 %v2074_v28, %v2072_v2 }
 0x25b   : > { %2083 = vpow2.f32 %v1355_v20 }
 0x25c   : > { %v1419_v38 = vmul.f32 1.442695, %v1293_v35  ;;  %v1421_v11 = vmul.f32 1.442695, %v1294_v48  ;;  %2085 = vpow2.f32 %v1357_v15  ;;  %v3740_v15 = vld [vmem:[#allocation24_spill] sm:$0xff]  ;;  %v3741_v35 = vld [vmem:[#allocation25_spill] sm:$0xff] }
 0x25d   : > { %1511 = vadd.xlane.f32.xlu1 %v1510_v7  ;;  %v1135_v28 = vsub.f32 %v3740_v15, %v3093_v49  ;;  %v1136_v12 = vsub.f32 %v3741_v35, %v3096_v5  ;;  %v3742_v7 = vld [vmem:[#allocation26_spill] sm:$0xff] }
 0x25e   : > { %2087 = vpow2.f32 %v1419_v38  ;;  %v1151_v38 = vsub.f32 %v3742_v7, %v3111_v44 }
 0x25f   : > { %v2076_v29 = vpop.eup %2075  ;;  %2089 = vpow2.f32 %v1421_v11  ;;  %v1167_v48 = vmul.f32 1.442695, %v1135_v28  ;;  %v1169_v11 = vmul.f32 1.442695, %v1136_v12 }
 0x260   : > { %v2078_v26 = vpop.eup %2077 }
 0x261   : > { %v1465_v33 = vadd.f32 %v2078_v26, %v2076_v29  ;;  %v3743_v29 = vld [vmem:[#allocation27_spill] sm:$0xff]  ;;  %2091 = vpow2.f32 %v1167_v48 }
 0x262   : > { %v1152_v26 = vsub.f32 %v3743_v29, %v3114_v39  ;;  %2093 = vpow2.f32 %v1169_v11 }
 0x263   : > { %v2080_v34 = vpop.eup %2079  ;;  %1466 = vadd.xlane.f32.xlu0 %v1465_v33  ;;  %v1199_v33 = vmul.f32 1.442695, %v1151_v38 }
 0x264   : > { %v2082_v1 = vpop.eup %2081 }
 0x265   : > { %v1513_v9 = vadd.f32 %v2082_v1, %v2080_v34  ;;  %v2084_v59 = vpop.eup %2083  ;;  %v1137_v34 = vsub.f32 %v3124_v14, %v3127_v50  ;;  %v1201_v1 = vmul.f32 1.442695, %v1152_v26  ;;  %2095 = vpow2.f32 %v1199_v33 }
 0x266   : > { %v2086_v51 = vpop.eup %2085 }
 0x267   : > { %1514 = vadd.xlane.f32.xlu0 %v1513_v9  ;;  %v1468_v3 = vadd.f32 %v2086_v51, %v2084_v59  ;;  %v1171_v9 = vmul.f32 1.442695, %v1137_v34  ;;  %2097 = vpow2.f32 %v1201_v1  ;;  %v3744_v59 = vld [vmem:[#allocation30_spill] sm:$0xff]  ;;  %v3745_v51 = vld [vmem:[#allocation28_spill] sm:$0xff]  ;;  %v1154_v34 = vsub.f32 %v3147_v8, %v3154_v17 }
 0x268   : > { %v2088_v42 = vpop.eup %2087 }
 0x269   : > { %v2090_v2 = vpop.eup %2089  ;;  %1469 = vadd.xlane.f32.xlu1 %v1468_v3  ;;  %v1153_v3 = vsub.f32 %v3745_v51, %v3744_v59  ;;  %2099 = vpow2.f32 %v1171_v9 }
 0x26a   : > { %v1516_v20 = vadd.f32 %v2090_v2, %v2088_v42  ;;  %v3746_v2 = vld [vmem:[#allocation29_spill] sm:$0xff] }
 0x26b   : > { %v2092_v42 = vpop.eup %2091  ;;  %v1203_v38 = vmul.f32 1.442695, %v1153_v3  ;;  %v3747_v3 = vld [vmem:[#allocation32_spill] sm:$0xff] }
 0x26c   : > { %v2094_v48 = vpop.eup %2093 }
 0x26d   : > { %1517 = vadd.xlane.f32.xlu1 %v1516_v20  ;;  %v1138_v20 = vsub.f32 %v3746_v2, %v3141_v54 }
 0x26f   : > { %v2096_v26 = vpop.eup %2095  ;;  %v1173_v33 = vmul.f32 1.442695, %v1138_v20 }
 0x271   : > { %v2098_v56 = vpop.eup %2097 }
 0x284   : > { %v1425_v28 = vpop.xlane.xlu0 %1424 }
 0x285   : > { %v1519_v12 = vadd.f32 %v2092_v42, %v1425_v28  ;;  %v1205_v42 = vmul.f32 1.442695, %v1154_v34  ;;  %v3748_v28 = vld [vmem:[#allocation31_spill] sm:$0xff]  ;;  %v3751_v34 = vld [vmem:[#allocation34_spill] sm:$0xff] }
 0x286   : > { %v1428_v11 = vpop.xlane.xlu1 %1427  ;;  %v1140_v21 = vsub.f32 %v3752_v41, %v3751_v34 }
 0x287   : > { %2101 = vlog2.f32 %v1519_v12  ;;  %v1520_v25 = vadd.f32 %v2094_v48, %v1428_v11  ;;  %v1139_v12 = vsub.f32 %v3748_v28, %v3747_v3  ;;  %v2100_v11 = vpop.eup %2099 }
 0x288   : > { %v1473_v1 = vpop.xlane.xlu0 %1472 }
 0x289   : > { %2103 = vlog2.f32 %v1520_v25  ;;  %v1535_v9 = vadd.f32 %v2096_v26, %v1473_v1  ;;  %v1175_v58 = vmul.f32 1.442695, %v1139_v12  ;;  %v3750_v26 = vld [vmem:[#allocation33_spill] sm:$0xff] }
 0x28a   : > { %2105 = vpow2.f32 %v1203_v38  ;;  %v1476_v31 = vpop.xlane.xlu1 %1475  ;;  %v3749_v38 = vld [vmem:[#allocation8_spill] sm:$0xff] }
 0x28b   : > { %2107 = vlog2.f32 %v1535_v9  ;;  %v1536_v48 = vadd.f32 %v2098_v56, %v1476_v31  ;;  %v1155_v1 = vsub.f32 %v3750_v26, %v3749_v38 }
 0x28c   : > { %2109 = vpow2.f32 %v1173_v33 }
 0x28d   : > { %2111 = vlog2.f32 %v1536_v48  ;;  %v1207_v12 = vmul.f32 1.442695, %v1155_v1 }
 0x28e   : > { %2113 = vpow2.f32 %v1205_v42 }
 0x290   : > { %v1431_v20 = vpop.xlane.xlu0 %1430 }
 0x291   : > { %v1521_v30 = vadd.f32 %v2100_v11, %v1431_v20  ;;  %v2102_v25 = vpop.eup %2101 }
 0x292   : > { %v1552_v9 = vmul.f32 0.6931472, %v2102_v25 }
 0x293   : > { %2115 = vlog2.f32 %v1521_v30  ;;  %v2104_v33 = vpop.eup %2103 }
 0x294   : > { %v2106_v36 = vpop.eup %2105  ;;  %2117 = vpow2.f32 %v1175_v58  ;;  %v1615_v31 = vadd.f32 %v1552_v9, %v3093_v49  ;;  %v1554_v56 = vmul.f32 0.6931472, %v2104_v33  ;;  %v1479_v48 = vpop.xlane.xlu0 %1478  ;;  %v1177_v9 = vmul.f32 1.442695, %v1140_v21 }
 0x295   : > { %v2108_v11 = vpop.eup %2107  ;;  %v1537_v30 = vadd.f32 %v2106_v36, %v1479_v48  ;;  %v1156_v33 = vsub.f32 %v3187_v10, %v3190_v19 }
 0x296   : > { %v2110_v42 = vpop.eup %2109  ;;  %v1647_v20 = vsub.f32 %v1615_v31, %v3740_v15  ;;  %v1616_v58 = vadd.f32 %v1554_v56, %v3096_v5  ;;  %v1584_v25 = vmul.f32 0.6931472, %v2108_v11  ;;  %v1434_v49 = vpop.xlane.xlu1 %1433 }
 0x297   : > { %2119 = vlog2.f32 %v1537_v30  ;;  %v1522_v63 = vadd.f32 %v2110_v42, %v1434_v49  ;;  %v2112_v23 = vpop.eup %2111  ;;  %v1209_v48 = vmul.f32 1.442695, %v1156_v33  ;;  %v3753_v42 = vld [vmem:[#allocation11_spill] sm:$0xff]  ;;  %v3756_v33 = vld [vmem:[#allocation13_spill] sm:$0xff] }
 0x298   : > { %1680 = vst.msk [vmem:[%s3404_s6] sm:$0xff] %vm1679_vm0, %v1647_v20  ;;  %v1648_v36 = vsub.f32 %v1616_v58, %v3741_v35  ;;  %v1631_v1 = vadd.f32 %v1584_v25, %v3111_v44  ;;  %v1586_v15 = vmul.f32 0.6931472, %v2112_v23  ;;  %v2114_v31 = vpop.eup %2113  ;;  %v3754_v35 = vld [vmem:[#allocation10_spill] sm:$0xff] }
 0x299   : > { %2121 = vlog2.f32 %v1522_v63  ;;  %v1141_v20 = vsub.f32 %v3754_v35, %v3753_v42 }
 0x29a   : > { %2123 = vpow2.f32 %v1207_v12  ;;  %1681 = vst.msk [vmem:[%s3404_s6 + $0x8] sm:$0xff] %vm1679_vm0, %v1648_v36  ;;  %v1663_v5 = vsub.f32 %v1631_v1, %v3742_v7  ;;  %v1482_v21 = vpop.xlane.xlu1 %1481  ;;  %v1632_v11 = vadd.f32 %v1586_v15, %v3114_v39  ;;  %v3757_v15 = vld [vmem:[#allocation15_spill] sm:$0xff] }
 0x29b   : > { %2125 = vpow2.f32 %v1177_v9  ;;  %v1538_v30 = vadd.f32 %v2114_v31, %v1482_v21  ;;  %v1179_v39 = vmul.f32 1.442695, %v1141_v20  ;;  %v3755_v9 = vld [vmem:[#allocation14_spill] sm:$0xff]  ;;  %v3758_v31 = vld [vmem:[#allocation12_spill] sm:$0xff] }
 0x29c   : > { %1696 = vst.msk [vmem:[%s3404_s6 + $0x80] sm:$0xff] %vm1679_vm0, %v1663_v5  ;;  %v1664_v63 = vsub.f32 %v1632_v11, %v3743_v29  ;;  %v1157_v36 = vsub.f32 %v3756_v33, %v3755_v9 }
 0x29d   : > { %v2116_v56 = vpop.eup %2115  ;;  %2127 = vlog2.f32 %v1538_v30 }
 0x29e   : > { %v1556_v44 = vmul.f32 0.6931472, %v2116_v56  ;;  %v2118_v23 = vpop.eup %2117  ;;  %2129 = vpow2.f32 %v1209_v48  ;;  %1697 = vst.msk [vmem:[%s3404_s6 + $0x88] sm:$0xff] %vm1679_vm0, %v1664_v63  ;;  %v1211_v20 = vmul.f32 1.442695, %v1157_v36 }
 0x2a0   : > { %v1617_v7 = vadd.f32 %v1556_v44, %v3127_v50  ;;  %v1437_v12 = vpop.xlane.xlu0 %1436  ;;  %v1142_v50 = vsub.f32 %v3758_v31, %v3757_v15 }
 0x2a1   : > { %v1523_v58 = vadd.f32 %v2118_v23, %v1437_v12  ;;  %v2120_v49 = vpop.eup %2119 }
 0x2a2   : > { %v1649_v25 = vsub.f32 %v1617_v7, %v3124_v14  ;;  %v1588_v29 = vmul.f32 0.6931472, %v2120_v49  ;;  %v1181_v12 = vmul.f32 1.442695, %v1142_v50 }
 0x2a3   : > { %2131 = vlog2.f32 %v1523_v58  ;;  %v2122_v1 = vpop.eup %2121  ;;  %v1158_v58 = vsub.f32 %v3223_v32, %v3226_v13 }
 0x2a4   : > { %1682 = vst.msk [vmem:[%s3404_s6 + $0x10] sm:$0xff] %vm1679_vm0, %v1649_v25  ;;  %v2124_v5 = vpop.eup %2123  ;;  %2133 = vpow2.f32 %v1179_v39  ;;  %v1633_v21 = vadd.f32 %v1588_v29, %v3744_v59  ;;  %v1558_v56 = vmul.f32 0.6931472, %v2122_v1  ;;  %v1485_v48 = vpop.xlane.xlu0 %1484  ;;  %v1143_v1 = vsub.f32 %v3232_v22, %v3235_v18 }
 0x2a5   : > { %v2126_v14 = vpop.eup %2125  ;;  %v1539_v11 = vadd.f32 %v2124_v5, %v1485_v48  ;;  %v1213_v29 = vmul.f32 1.442695, %v1158_v58 }
 0x2a6   : > { %v1440_v30 = vpop.xlane.xlu1 %1439  ;;  %v1665_v44 = vsub.f32 %v1633_v21, %v3745_v51  ;;  %v1618_v63 = vadd.f32 %v1558_v56, %v3141_v54  ;;  %v1183_v48 = vmul.f32 1.442695, %v1143_v1 }
 0x2a7   : > { %v1524_v23 = vadd.f32 %v2126_v14, %v1440_v30  ;;  %v2128_v7 = vpop.eup %2127  ;;  %2135 = vlog2.f32 %v1539_v11 }
 0x2a8   : > { %1698 = vst.msk [vmem:[%s3404_s6 + $0x90] sm:$0xff] %vm1679_vm0, %v1665_v44  ;;  %v1650_v59 = vsub.f32 %v1618_v63, %v3746_v2  ;;  %v1590_v39 = vmul.f32 0.6931472, %v2128_v7  ;;  %v2130_v25 = vpop.eup %2129 }
 0x2a9   : > { %2137 = vlog2.f32 %v1524_v23 }
 0x2aa   : > { %v1488_v49 = vpop.xlane.xlu1 %1487  ;;  %2139 = vpow2.f32 %v1211_v20  ;;  %1683 = vst.msk [vmem:[%s3404_s6 + $0x18] sm:$0xff] %vm1679_vm0, %v1650_v59  ;;  %v1634_v54 = vadd.f32 %v1590_v39, %v3154_v17  ;;  %v3759_v20 = vld [vmem:[#allocation17_spill] sm:$0xff] }
 0x2ab   : > { %v1540_v51 = vadd.f32 %v2130_v25, %v1488_v49  ;;  %2141 = vpow2.f32 %v1181_v12  ;;  %v1144_v44 = vsub.f32 %v3759_v20, %v3249_v55 }
 0x2ac   : > { %v1666_v50 = vsub.f32 %v1634_v54, %v3147_v8  ;;  %v1159_v8 = vsub.f32 %v3237_v46, %v3246_v27 }
 0x2ad   : > { %v2132_v36 = vpop.eup %2131  ;;  %2143 = vlog2.f32 %v1540_v51  ;;  %v1185_v54 = vmul.f32 1.442695, %v1144_v44 }
 0x2ae   : > { %v1560_v2 = vmul.f32 0.6931472, %v2132_v36  ;;  %v2134_v5 = vpop.eup %2133  ;;  %1699 = vst.msk [vmem:[%s3404_s6 + $0x98] sm:$0xff] %vm1679_vm0, %v1666_v50  ;;  %2145 = vpow2.f32 %v1213_v29  ;;  %v1215_v49 = vmul.f32 1.442695, %v1159_v8  ;;  %v1160_v29 = vsub.f32 %v3259_v6, %v3262_v57 }
 0x2b0   : > { %v1619_v21 = vadd.f32 %v1560_v2, %v3747_v3  ;;  %v1443_v56 = vpop.xlane.xlu0 %1442 }
 0x2b1   : > { %v1525_v17 = vadd.f32 %v2134_v5, %v1443_v56  ;;  %v2136_v11 = vpop.eup %2135 }
 0x2b2   : > { %v1651_v14 = vsub.f32 %v1619_v21, %v3748_v28  ;;  %v1592_v63 = vmul.f32 0.6931472, %v2136_v11  ;;  %v1217_v21 = vmul.f32 1.442695, %v1160_v29  ;;  %v1162_v29 = vsub.f32 %v3295_v24, %v3298_v52 }
 0x2b3   : > { %2147 = vlog2.f32 %v1525_v17  ;;  %v2138_v30 = vpop.eup %2137 }
 0x2b4   : > { %1684 = vst.msk [vmem:[%s3404_s6 + $0x20] sm:$0xff] %vm1679_vm0, %v1651_v14  ;;  %v1562_v23 = vmul.f32 0.6931472, %v2138_v30  ;;  %v2140_v3 = vpop.eup %2139  ;;  %2149 = vpow2.f32 %v1183_v48  ;;  %v1635_v7 = vadd.f32 %v1592_v63, %v3749_v38  ;;  %v1491_v12 = vpop.xlane.xlu0 %1490  ;;  %v1161_v63 = vsub.f32 %v3273_v45, %v3282_v61 }
 0x2b5   : > { %v2142_v28 = vpop.eup %2141  ;;  %v1541_v59 = vadd.f32 %v2140_v3, %v1491_v12 }
 0x2b6   : > { %v1620_v58 = vadd.f32 %v1562_v23, %v3751_v34  ;;  %v1446_v39 = vpop.xlane.xlu1 %1445  ;;  %v1667_v51 = vsub.f32 %v1635_v7, %v3750_v26  ;;  %v1146_v23 = vsub.f32 %v3279_v40, %v3285_v53 }
 0x2b7   : > { %v2144_v25 = vpop.eup %2143  ;;  %v1526_v36 = vadd.f32 %v2142_v28, %v1446_v39  ;;  %2151 = vlog2.f32 %v1541_v59 }
 0x2b8   : > { %v1652_v1 = vsub.f32 %v1620_v58, %v3752_v41  ;;  %v1594_v50 = vmul.f32 0.6931472, %v2144_v25  ;;  %1700 = vst.msk [vmem:[%s3404_s6 + $0xa0] sm:$0xff] %vm1679_vm0, %v1667_v51  ;;  %v2146_v38 = vpop.eup %2145  ;;  %v1145_v41 = vsub.f32 %v3268_v43, %v3271_v60 }
 0x2b9   : > { %2153 = vlog2.f32 %v1526_v36 }
 0x2ba   : > { %1685 = vst.msk [vmem:[%s3404_s6 + $0x28] sm:$0xff] %vm1679_vm0, %v1652_v1  ;;  %v1636_v34 = vadd.f32 %v1594_v50, %v3190_v19  ;;  %v1494_v2 = vpop.xlane.xlu1 %1493  ;;  %2155 = vpow2.f32 %v1215_v49  ;;  %v1187_v30 = vmul.f32 1.442695, %v1145_v41  ;;  %v1219_v49 = vmul.f32 1.442695, %v1161_v63 }
 0x2bb   : > { %v1542_v26 = vadd.f32 %v2146_v38, %v1494_v2  ;;  %2157 = vpow2.f32 %v1185_v54  ;;  %v1189_v54 = vmul.f32 1.442695, %v1146_v23  ;;  %v1221_v2 = vmul.f32 1.442695, %v1162_v29 }
 0x2bc   : > { %v1668_v56 = vsub.f32 %v1636_v34, %v3187_v10 }
 0x2bd   : > { %v2148_v5 = vpop.eup %2147  ;;  %2159 = vlog2.f32 %v1542_v26 }
 0x2be   : > { %v1564_v17 = vmul.f32 0.6931472, %v2148_v5  ;;  %1701 = vst.msk [vmem:[%s3404_s6 + $0xa8] sm:$0xff] %vm1679_vm0, %v1668_v56  ;;  %v2150_v48 = vpop.eup %2149  ;;  %2161 = vpow2.f32 %v1217_v21 }
 0x2c0   : > { %v1621_v14 = vadd.f32 %v1564_v17, %v3753_v42  ;;  %v1449_v19 = vpop.xlane.xlu0 %1448 }
 0x2c1   : > { %v1527_v11 = vadd.f32 %v2150_v48, %v1449_v19  ;;  %v2152_v44 = vpop.eup %2151  ;;  %v1163_v19 = vsub.f32 %v3309_v16, %v3318_v62 }
 0x2c2   : > { %v1653_v8 = vsub.f32 %v1621_v14, %v3754_v35  ;;  %v1596_v3 = vmul.f32 0.6931472, %v2152_v44 }
 0x2c3   : > { %2163 = vlog2.f32 %v1527_v11  ;;  %v2154_v10 = vpop.eup %2153  ;;  %v1148_v11 = vsub.f32 %v3315_v37, %v3321_v0 }
 0x2c4   : > { %1686 = vst.msk [vmem:[%s3404_s6 + $0x30] sm:$0xff] %vm1679_vm0, %v1653_v8  ;;  %v1566_v7 = vmul.f32 0.6931472, %v2154_v10  ;;  %v2156_v42 = vpop.eup %2155  ;;  %2165 = vpow2.f32 %v1187_v30  ;;  %v1637_v12 = vadd.f32 %v1596_v3, %v3755_v9  ;;  %v1497_v28 = vpop.xlane.xlu0 %1496 }
 0x2c5   : > { %v2158_v35 = vpop.eup %2157  ;;  %v1543_v59 = vadd.f32 %v2156_v42, %v1497_v28  ;;  %v1223_v42 = vmul.f32 1.442695, %v1163_v19 }
 0x2c6   : > { %v1622_v58 = vadd.f32 %v1566_v7, %v3757_v15  ;;  %v1452_v39 = vpop.xlane.xlu1 %1451  ;;  %v1669_v51 = vsub.f32 %v1637_v12, %v3756_v33  ;;  %v1193_v12 = vmul.f32 1.442695, %v1148_v11 }
 0x2c7   : > { %v2160_v25 = vpop.eup %2159  ;;  %v1528_v36 = vadd.f32 %v2158_v35, %v1452_v39  ;;  %2167 = vlog2.f32 %v1543_v59  ;;  %v3761_v59 = vld [vmem:[#allocation16_spill] sm:$0xff] }
 0x2c8   : > { %v1654_v1 = vsub.f32 %v1622_v58, %v3758_v31  ;;  %v1598_v50 = vmul.f32 0.6931472, %v2160_v25  ;;  %1702 = vst.msk [vmem:[%s3404_s6 + $0xb0] sm:$0xff] %vm1679_vm0, %v1669_v51  ;;  %v2162_v9 = vpop.eup %2161  ;;  %v1147_v31 = vsub.f32 %v3304_v47, %v3307_v4  ;;  %v3760_v58 = vld [vmem:[#allocation18_spill] sm:$0xff] }
 0x2c9   : > { %2169 = vlog2.f32 %v1528_v36  ;;  %v1164_v39 = vsub.f32 %v3761_v59, %v3760_v58 }
 0x2ca   : > { %1687 = vst.msk [vmem:[%s3404_s6 + $0x38] sm:$0xff] %vm1679_vm0, %v1654_v1  ;;  %v1638_v15 = vadd.f32 %v1598_v50, %v3226_v13  ;;  %v1500_v38 = vpop.xlane.xlu1 %1499  ;;  %2171 = vpow2.f32 %v1219_v49  ;;  %v1191_v17 = vmul.f32 1.442695, %v1147_v31  ;;  %v3763_v1 = vld [vmem:[#allocation19_spill] sm:$0xff] }
 0x2cb   : > { %v1544_v33 = vadd.f32 %v2162_v9, %v1500_v38  ;;  %2173 = vpow2.f32 %v1189_v54  ;;  %v1225_v36 = vmul.f32 1.442695, %v1164_v39  ;;  %v3764_v38 = vld [vmem:[#allocation37_spill] sm:$0xff] }
 0x2cc   : > { %v1670_v26 = vsub.f32 %v1638_v15, %v3223_v32 }
 0x2cd   : > { %v2164_v34 = vpop.eup %2163  ;;  %2175 = vlog2.f32 %v1544_v33  ;;  %v3765_v33 = vld [vmem:[#allocation35_spill] sm:$0xff] }
 0x2ce   : > { %v1568_v5 = vmul.f32 0.6931472, %v2164_v34  ;;  %1703 = vst.msk [vmem:[%s3404_s6 + $0xb8] sm:$0xff] %vm1679_vm0, %v1670_v26  ;;  %v2166_v21 = vpop.eup %2165  ;;  %2177 = vpow2.f32 %v1221_v2 }
 0x2d0   : > { %v1623_v56 = vadd.f32 %v1568_v5, %v3235_v18  ;;  %v1455_v13 = vpop.xlane.xlu0 %1454 }
 0x2d1   : > { %v1529_v41 = vadd.f32 %v2166_v21, %v1455_v13  ;;  %v2168_v14 = vpop.eup %2167  ;;  %v3766_v13 = vld [vmem:[#allocation38_spill] sm:$0xff] }
 0x2d2   : > { %v1655_v48 = vsub.f32 %v1623_v56, %v3232_v22  ;;  %v1600_v30 = vmul.f32 0.6931472, %v2168_v14 }
 0x2d3   : > { %2179 = vlog2.f32 %v1529_v41  ;;  %v2170_v32 = vpop.eup %2169  ;;  %v3767_v41 = vld [vmem:[#allocation36_spill] sm:$0xff] }
 0x2d4   : > { %1688 = vst.msk [vmem:[%s3404_s6 + $0x40] sm:$0xff] %vm1679_vm0, %v1655_v48  ;;  %v1570_v8 = vmul.f32 0.6931472, %v2170_v32  ;;  %v2172_v18 = vpop.eup %2171  ;;  %2181 = vpow2.f32 %v1191_v17  ;;  %v1639_v44 = vadd.f32 %v1600_v30, %v3246_v27  ;;  %v1503_v10 = vpop.xlane.xlu0 %1502  ;;  %v1150_v17 = vsub.f32 %v3767_v41, %v3766_v13 }
 0x2d5   : > { %v2174_v22 = vpop.eup %2173  ;;  %v1545_v23 = vadd.f32 %v2172_v18, %v1503_v10 }
 0x2d6   : > { %v1624_v63 = vadd.f32 %v1570_v8, %v3249_v55  ;;  %v1458_v3 = vpop.xlane.xlu1 %1457  ;;  %v1671_v28 = vsub.f32 %v1639_v44, %v3237_v46  ;;  %v1197_v44 = vmul.f32 1.442695, %v1150_v17 }
 0x2d7   : > { %v2176_v7 = vpop.eup %2175  ;;  %v1530_v35 = vadd.f32 %v2174_v22, %v1458_v3  ;;  %2183 = vlog2.f32 %v1545_v23  ;;  %v3769_v23 = vld [vmem:[#allocation21_spill] sm:$0xff] }
 0x2d8   : > { %v1656_v25 = vsub.f32 %v1624_v63, %v3759_v20  ;;  %v1602_v49 = vmul.f32 0.6931472, %v2176_v7  ;;  %1704 = vst.msk [vmem:[%s3404_s6 + $0xc0] sm:$0xff] %vm1679_vm0, %v1671_v28  ;;  %v2178_v27 = vpop.eup %2177  ;;  %v3762_v20 = vld [vmem:[#allocation20_spill] sm:$0xff]  ;;  %v3768_v63 = vld [vmem:[#allocation39_spill] sm:$0xff] }
 0x2d9   : > { %2185 = vlog2.f32 %v1530_v35  ;;  %v1149_v50 = vsub.f32 %v3763_v1, %v3762_v20  ;;  %v1166_v3 = vsub.f32 %v3769_v23, %v3768_v63 }
 0x2da   : > { %1689 = vst.msk [vmem:[%s3404_s6 + $0x48] sm:$0xff] %vm1679_vm0, %v1656_v25  ;;  %v1640_v55 = vadd.f32 %v1602_v49, %v3262_v57  ;;  %v1506_v54 = vpop.xlane.xlu1 %1505  ;;  %2187 = vpow2.f32 %v1223_v42  ;;  %v1165_v57 = vsub.f32 %v3765_v33, %v3764_v38 }
 0x2db   : > { %v1546_v46 = vadd.f32 %v2178_v27, %v1506_v54  ;;  %2189 = vpow2.f32 %v1193_v12  ;;  %v1195_v31 = vmul.f32 1.442695, %v1149_v50  ;;  %v1229_v35 = vmul.f32 1.442695, %v1166_v3 }
 0x2dc   : > { %v1672_v29 = vsub.f32 %v1640_v55, %v3259_v6  ;;  %v1227_v56 = vmul.f32 1.442695, %v1165_v57 }
 0x2dd   : > { %v2180_v51 = vpop.eup %2179  ;;  %2191 = vlog2.f32 %v1546_v46 }
 0x2de   : > { %v1572_v9 = vmul.f32 0.6931472, %v2180_v51  ;;  %1705 = vst.msk [vmem:[%s3404_s6 + $0xc8] sm:$0xff] %vm1679_vm0, %v1672_v29  ;;  %v2182_v15 = vpop.eup %2181  ;;  %2193 = vpow2.f32 %v1225_v36 }
 0x2e0   : > { %v1625_v34 = vadd.f32 %v1572_v9, %v3271_v60  ;;  %v1461_v2 = vpop.xlane.xlu0 %1460 }
 0x2e1   : > { %v1531_v26 = vadd.f32 %v2182_v15, %v1461_v2  ;;  %v2184_v5 = vpop.eup %2183 }
 0x2e2   : > { %v1657_v6 = vsub.f32 %v1625_v34, %v3268_v43  ;;  %v1604_v48 = vmul.f32 0.6931472, %v2184_v5 }
 0x2e3   : > { %2195 = vlog2.f32 %v1531_v26  ;;  %v2186_v21 = vpop.eup %2185 }
 0x2e4   : > { %1690 = vst.msk [vmem:[%s3404_s6 + $0x50] sm:$0xff] %vm1679_vm0, %v1657_v6  ;;  %v1574_v14 = vmul.f32 0.6931472, %v2186_v21  ;;  %v2188_v32 = vpop.eup %2187  ;;  %2197 = vpow2.f32 %v1195_v31  ;;  %v1641_v60 = vadd.f32 %v1604_v48, %v3282_v61  ;;  %v1509_v19 = vpop.xlane.xlu0 %1508 }
 0x2e5   : > { %v2190_v11 = vpop.eup %2189  ;;  %v1547_v30 = vadd.f32 %v2188_v32, %v1509_v19  ;;  %2199 = vpow2.f32 %v1227_v56 }
 0x2e6   : > { %v1626_v43 = vadd.f32 %v1574_v14, %v3285_v53  ;;  %v1464_v8 = vpop.xlane.xlu1 %1463  ;;  %v1673_v10 = vsub.f32 %v1641_v60, %v3273_v45 }
 0x2e7   : > { %v2192_v18 = vpop.eup %2191  ;;  %v1532_v22 = vadd.f32 %v2190_v11, %v1464_v8  ;;  %2201 = vlog2.f32 %v1547_v30 }
 0x2e8   : > { %v1658_v7 = vsub.f32 %v1626_v43, %v3279_v40  ;;  %v1606_v61 = vmul.f32 0.6931472, %v2192_v18  ;;  %1706 = vst.msk [vmem:[%s3404_s6 + $0xd0] sm:$0xff] %vm1679_vm0, %v1673_v10  ;;  %v2194_v53 = vpop.eup %2193 }
 0x2e9   : > { %2203 = vlog2.f32 %v1532_v22 }
 0x2ea   : > { %1691 = vst.msk [vmem:[%s3404_s6 + $0x58] sm:$0xff] %vm1679_vm0, %v1658_v7  ;;  %v1642_v42 = vadd.f32 %v1606_v61, %v3298_v52  ;;  %v1512_v12 = vpop.xlane.xlu1 %1511  ;;  %2205 = vpow2.f32 %v1197_v44 }
 0x2eb   : > { %v1548_v28 = vadd.f32 %v2194_v53, %v1512_v12 }
 0x2ec   : > { %v1674_v39 = vsub.f32 %v1642_v42, %v3295_v24 }
 0x2ed   : > { %v2196_v45 = vpop.eup %2195  ;;  %2207 = vlog2.f32 %v1548_v28 }
 0x2ee   : > { %v1576_v40 = vmul.f32 0.6931472, %v2196_v45  ;;  %1707 = vst.msk [vmem:[%s3404_s6 + $0xd8] sm:$0xff] %vm1679_vm0, %v1674_v39  ;;  %v2198_v25 = vpop.eup %2197  ;;  %2209 = vpow2.f32 %v1229_v35 }
 0x2ef   : > { %v2200_v54 = vpop.eup %2199 }
 0x2f0   : > { %v1627_v49 = vadd.f32 %v1576_v40, %v3307_v4  ;;  %v1467_v27 = vpop.xlane.xlu0 %1466 }
 0x2f1   : > { %v1533_v55 = vadd.f32 %v2198_v25, %v1467_v27  ;;  %v2202_v46 = vpop.eup %2201 }
 0x2f2   : > { %v1659_v52 = vsub.f32 %v1627_v49, %v3304_v47  ;;  %v1608_v24 = vmul.f32 0.6931472, %v2202_v46 }
 0x2f3   : > { %2211 = vlog2.f32 %v1533_v55  ;;  %v2204_v51 = vpop.eup %2203 }
 0x2f4   : > { %1692 = vst.msk [vmem:[%s3404_s6 + $0x60] sm:$0xff] %vm1679_vm0, %v1659_v52  ;;  %v1515_v36 = vpop.xlane.xlu0 %1514  ;;  %v1578_v29 = vmul.f32 0.6931472, %v2204_v51  ;;  %v1643_v9 = vadd.f32 %v1608_v24, %v3318_v62  ;;  %v2206_v4 = vpop.eup %2205 }
 0x2f5   : > { %v1549_v50 = vadd.f32 %v2200_v54, %v1515_v36 }
 0x2f6   : > { %v1628_v15 = vadd.f32 %v1578_v29, %v3321_v0  ;;  %v1470_v57 = vpop.xlane.xlu1 %1469  ;;  %v1675_v47 = vsub.f32 %v1643_v9, %v3309_v16 }
 0x2f7   : > { %2213 = vlog2.f32 %v1549_v50  ;;  %v2208_v34 = vpop.eup %2207  ;;  %v1534_v2 = vadd.f32 %v2206_v4, %v1470_v57 }
 0x2f8   : > { %v1660_v26 = vsub.f32 %v1628_v15, %v3315_v37  ;;  %v1610_v31 = vmul.f32 0.6931472, %v2208_v34  ;;  %1708 = vst.msk [vmem:[%s3404_s6 + $0xe0] sm:$0xff] %vm1679_vm0, %v1675_v47  ;;  %v2210_v6 = vpop.eup %2209 }
 0x2f9   : > { %2215 = vlog2.f32 %v1534_v2 }
 0x2fa   : > { %1693 = vst.msk [vmem:[%s3404_s6 + $0x68] sm:$0xff] %vm1679_vm0, %v1660_v26  ;;  %v1644_v62 = vadd.f32 %v1610_v31, %v3760_v58  ;;  %v1518_v0 = vpop.xlane.xlu1 %1517 }
 0x2fb   : > { %v1550_v5 = vadd.f32 %v2210_v6, %v1518_v0 }
 0x2fc   : > { %v1676_v56 = vsub.f32 %v1644_v62, %v3761_v59 }
 0x2fd   : > { %v2212_v21 = vpop.eup %2211  ;;  %2217 = vlog2.f32 %v1550_v5 }
 0x2fe   : > { %v1580_v16 = vmul.f32 0.6931472, %v2212_v21  ;;  %1709 = vst.msk [vmem:[%s3404_s6 + $0xe8] sm:$0xff] %vm1679_vm0, %v1676_v56 }
 0x300   : > { %v1629_v37 = vadd.f32 %v1580_v16, %v3762_v20 }
 0x301   : > { %v2214_v17 = vpop.eup %2213 }
 0x302   : > { %v1661_v48 = vsub.f32 %v1629_v37, %v3763_v1  ;;  %v1612_v14 = vmul.f32 0.6931472, %v2214_v17 }
 0x303   : > { %v2216_v32 = vpop.eup %2215 }
 0x304   : > { %1694 = vst.msk [vmem:[%s3404_s6 + $0x70] sm:$0xff] %vm1679_vm0, %v1661_v48  ;;  %v1645_v58 = vadd.f32 %v1612_v14, %v3764_v38  ;;  %v1582_v60 = vmul.f32 0.6931472, %v2216_v32 }
 0x306   : > { %v1677_v59 = vsub.f32 %v1645_v58, %v3765_v33  ;;  %v1630_v19 = vadd.f32 %v1582_v60, %v3766_v13 }
 0x307   : > { %v2218_v11 = vpop.eup %2217 }
 0x308   : > { %1710 = vst.msk [vmem:[%s3404_s6 + $0xf0] sm:$0xff] %vm1679_vm0, %v1677_v59  ;;  %v1662_v20 = vsub.f32 %v1630_v19, %v3767_v41  ;;  %v1614_v43 = vmul.f32 0.6931472, %v2218_v11 }
 0x30a   : > { %1695 = vst.msk [vmem:[%s3404_s6 + $0x78] sm:$0xff] %vm1679_vm0, %v1662_v20  ;;  %v1646_v1 = vadd.f32 %v1614_v43, %v3768_v63 }
 0x30c   : > { %v1678_v30 = vsub.f32 %v1646_v1, %v3769_v23 }
 0x30e   : > { %1711 = vst.msk [vmem:[%s3404_s6 + $0xf8] sm:$0xff] %vm1679_vm0, %v1678_v30 }
 0x30f PF: > { %s18_s14 = sadd.s32 1, %s2333_s14   ;;  %s3770_s9 = smov %s2317_s10 }
 0x310   : > { %p15_p11 = scmp.ge.s32.totalorder %s18_s14, 4   ;;  %s3771_s10 = smov %s2321_s11 }
 0x311   : > { %s3772_s11 = smov %s2406_s21  ;;  %s3773_s12 = smov %s2329_s13 }
 0x312   : > { %s3774_s13 = smov %s3776_s16  ;;  %17 = sbr.rel (!%p15_p11) target bundleno = 6 (0x6), region = 81 }
 0x319   :  { %1742 = vsyncpa [#allocation3], 1 }
 0x31a   :  { %1744 = vsyncpa [#allocation3 + $0x1], 1 }
 0x31b   :  { %1745 = vsyncpa [#allocation5], 1 }
 0x31c   :  { %1747 = vsyncpa [#allocation5 + $0x1], 1 }

</bundles_post_ra>
